<compile_context>
chip_gen: v6e
topology: v6e:2x2x1
jax: 0.10.0
libtpu: 0.0.40
codegen_flags: <defaults>
</compile_context>

<pallas_src>
import functools

import jax
import jax.numpy as jnp
from jax import lax
from jax.experimental import pallas as pl
from jax.experimental.pallas import tpu as pltpu


# ------------------------------ helpers ------------------------------------

def _pick_tile(dim, candidates):
    """Largest candidate tile that evenly divides `dim`; fall back to the full dim."""
    for c in candidates:
        if c <= dim and dim % c == 0:
            return c
    return dim


def _vmem_limit(*tile_bytes):
    """Tight per-kernel VMEM request: 2x (double-buffered) every window + compiler headroom,
    clamped to 48 MiB so v7x (64 MiB physical VMEM per TensorCore) keeps headroom."""
    need = 2 * sum(int(b) for b in tile_bytes) + (4 << 20)
    return int(min(max(need, 8 << 20), 48 << 20))


# -------------- fused embedding linear + positional-encoding add ------------

def _embed_pos_kernel(x_ref, w_ref, b_ref, pos_ref, o_ref):
    y = jnp.dot(x_ref[0].astype(jnp.bfloat16), w_ref[...],
                preferred_element_type=jnp.float32)
    o_ref[0] = (y + b_ref[...] + pos_ref[0]).astype(o_ref.dtype)


def embed_pos(x, w, b, pos):
    """x:(B,S,K) f32, w:(K,D) bf16, b:(1,D) f32, pos:(1,max_len,D) f32 -> (B,S,D) bf16."""
    B, S, K = x.shape
    D = w.shape[1]
    ts = _pick_tile(S, (512, 256, 128, 64, 32, 16, 8))
    return pl.pallas_call(
        _embed_pos_kernel,
        grid=(B, S // ts),
        in_specs=[
            pl.BlockSpec((1, ts, K), lambda b, s: (b, s, 0)),
            pl.BlockSpec((K, D), lambda b, s: (0, 0)),
            pl.BlockSpec((1, D), lambda b, s: (0, 0)),
            pl.BlockSpec((1, ts, D), lambda b, s: (0, s, 0)),
        ],
        out_specs=pl.BlockSpec((1, ts, D), lambda b, s: (b, s, 0)),
        out_shape=jax.ShapeDtypeStruct((B, S, D), jnp.bfloat16),
        compiler_params=pltpu.CompilerParams(
            dimension_semantics=("parallel", "parallel"),
            vmem_limit_bytes=_vmem_limit(
                ts * K * 4, K * D * 2, D * 4, ts * D * 4, ts * D * 2),
        ),
        cost_estimate=pl.CostEstimate(
            flops=2 * B * S * K * D,
            transcendentals=0,
            bytes_accessed=B * S * K * 4 + K * D * 2 + S * D * 4 + B * S * D * 2,
        ),
    )(x, w, b, pos)


# --- fused attention sub-layer: in_proj + attn + out_proj + residual + LN1 ---

def _attn_kernel(xq_ref, xf_ref, win_ref, bin_ref, wo_ref, bo_ref,
                 g_ref, bln_ref, o_ref, o_acc, *, nhead, scale):
    D = xq_ref.shape[-1]
    dh = D // nhead

    xq = xq_ref[0]                        # (tq, D) bf16 (query rows of this tile)
    xf = xf_ref[0]                        # (S,  D) bf16 (full sequence, for K/V)
    win = win_ref[...]                    # (D, 3D) bf16
    bi = bin_ref[...]                     # (1, 3D) f32

    # fused in-projection; one bf16 cast per operand
    q = (jnp.dot(xq, win[:, :D], preferred_element_type=jnp.float32)
         + bi[:, :D]).astype(jnp.bfloat16)
    k = (jnp.dot(xf, win[:, D:2 * D], preferred_element_type=jnp.float32)
         + bi[:, D:2 * D]).astype(jnp.bfloat16)
    v = (jnp.dot(xf, win[:, 2 * D:], preferred_element_type=jnp.float32)
         + bi[:, 2 * D:]).astype(jnp.bfloat16)

    for h in range(nhead):                # static loop; head results land in VMEM scratch
        qh = q[:, h * dh:(h + 1) * dh]
        kh = k[:, h * dh:(h + 1) * dh]
        vh = v[:, h * dh:(h + 1) * dh]
        s = lax.dot_general(qh, kh, (((1,), (1,)), ((), ())),
                            preferred_element_type=jnp.float32) * scale  # (tq, S)
        m = jnp.max(s, axis=-1, keepdims=True)
        p = jnp.exp(s - m)
        p = p * pl.reciprocal(jnp.sum(p, axis=-1, keepdims=True), approx=True)
        o_acc[:, h * dh:(h + 1) * dh] = jnp.dot(
            p.astype(jnp.bfloat16), vh, preferred_element_type=jnp.float32)

    attn = jnp.dot(o_acc[...].astype(jnp.bfloat16), wo_ref[...],
                   preferred_element_type=jnp.float32) + bo_ref[...]

    # residual + LayerNorm1 (f32 statistics)
    y = xq.astype(jnp.float32) + attn
    mu = jnp.mean(y, axis=-1, keepdims=True)
    yc = y - mu
    var = jnp.mean(yc * yc, axis=-1, keepdims=True)
    o_ref[0] = ((yc * lax.rsqrt(var + 1e-5)) * g_ref[...]
                + bln_ref[...]).astype(o_ref.dtype)


def attn_block(h, win, bin_proj, wo, bo, g, bln, nhead):
    """h:(B,S,D) bf16 -> (B,S,D) bf16 (post-LN1).  Query-tiled (B, S//tq) parallel grid."""
    B, S, D = h.shape
    dh = D // nhead
    scale = 1.0 / float(dh) ** 0.5
    tq = _pick_tile(S, (256, 128, 64, 32, 16, 8))
    n_qt = S // tq

    flops = B * (2 * S * D * D + 4 * S * D * D * n_qt   # Q proj + K/V proj per q-tile
                 + 4 * S * S * D + 2 * S * D * D)        # scores + PV + out-proj
    bytes_accessed = (B * S * D * 2 * (1 + n_qt) + (3 * D * D + D * D) * 2
                      + 6 * D * 4 + B * S * D * 2)

    return pl.pallas_call(
        functools.partial(_attn_kernel, nhead=nhead, scale=scale),
        grid=(B, n_qt),
        in_specs=[
            pl.BlockSpec((1, tq, D), lambda b, qi: (b, qi, 0)),   # query rows
            pl.BlockSpec((1, S, D), lambda b, qi: (b, 0, 0)),     # full sequence (K/V)
            pl.BlockSpec((D, 3 * D), lambda b, qi: (0, 0)),
            pl.BlockSpec((1, 3 * D), lambda b, qi: (0, 0)),
            pl.BlockSpec((D, D), lambda b, qi: (0, 0)),
            pl.BlockSpec((1, D), lambda b, qi: (0, 0)),
            pl.BlockSpec((1, D), lambda b, qi: (0, 0)),
            pl.BlockSpec((1, D), lambda b, qi: (0, 0)),
        ],
        out_specs=pl.BlockSpec((1, tq, D), lambda b, qi: (b, qi, 0)),
        out_shape=jax.ShapeDtypeStruct((B, S, D), jnp.bfloat16),
        scratch_shapes=[pltpu.VMEM((tq, D), jnp.float32)],
        compiler_params=pltpu.CompilerParams(
            dimension_semantics=("parallel", "parallel"),
            vmem_limit_bytes=_vmem_limit(
                tq * D * 2, S * D * 2, D * 3 * D * 2, 3 * D * 4,
                D * D * 2, 3 * D * 4, tq * D * 2, tq * S * 4, tq * D * 4),
        ),
        cost_estimate=pl.CostEstimate(
            flops=flops,
            transcendentals=B * nhead * S * S,
            bytes_accessed=bytes_accessed,
        ),
    )(h, h, win, bin_proj, wo, bo, g, bln)


# ----- fused FFN sub-layer: lin1 + ReLU + lin2 (weights resident) + LN2 ------

def _ffn_kernel(x_ref, w1_ref, b1_ref, w2_ref, b2_ref, g_ref, bn_ref, o_ref):
    x = x_ref[...]                                   # (tm, D) bf16
    h1 = jnp.dot(x, w1_ref[...], preferred_element_type=jnp.float32) + b1_ref[...]
    h1 = jnp.maximum(h1, 0.0)
    y = jnp.dot(h1.astype(jnp.bfloat16), w2_ref[...],
                preferred_element_type=jnp.float32) + b2_ref[...]

    # residual + LayerNorm2 (f32 statistics)
    y = x.astype(jnp.float32) + y
    mu = jnp.mean(y, axis=-1, keepdims=True)
    yc = y - mu
    var = jnp.mean(yc * yc, axis=-1, keepdims=True)
    o_ref[...] = ((yc * lax.rsqrt(var + 1e-5)) * g_ref[...]
                  + bn_ref[...]).astype(o_ref.dtype)


def ffn_block(x2, w1, b1, w2, b2, g, bn):
    """x2:(M,D) bf16, w1:(D,F) bf16, w2:(F,D) bf16 -> (M,D) bf16 (post-LN2)."""
    M, D = x2.shape
    F = w1.shape[1]
    # TODO(synk): if D*F bf16 weights ever exceed the VMEM budget, re-introduce an F-tiled
    #             "arbitrary" reduction axis; for d_model<=1024, F=2048 they comfortably fit.
    tm = _pick_tile(M, (512, 256, 128, 64, 32, 16, 8))
    return pl.pallas_call(
        _ffn_kernel,
        grid=(M // tm,),
        in_specs=[
            pl.BlockSpec((tm, D), lambda i: (i, 0)),
            pl.BlockSpec((D, F), lambda i: (0, 0)),
            pl.BlockSpec((1, F), lambda i: (0, 0)),
            pl.BlockSpec((F, D), lambda i: (0, 0)),
            pl.BlockSpec((1, D), lambda i: (0, 0)),
            pl.BlockSpec((1, D), lambda i: (0, 0)),
            pl.BlockSpec((1, D), lambda i: (0, 0)),
        ],
        out_specs=pl.BlockSpec((tm, D), lambda i: (i, 0)),
        out_shape=jax.ShapeDtypeStruct((M, D), jnp.bfloat16),
        compiler_params=pltpu.CompilerParams(
            dimension_semantics=("parallel",),
            vmem_limit_bytes=_vmem_limit(
                tm * D * 2, D * F * 2, F * 4, F * D * 2, 3 * D * 4,
                tm * F * 4, tm * D * 2),
        ),
        cost_estimate=pl.CostEstimate(
            flops=4 * M * D * F,
            transcendentals=0,
            bytes_accessed=2 * M * D * 2 + 2 * D * F * 2 + F * 4 + 3 * D * 4,
        ),
    )(x2, w1, b1, w2, b2, g, bn)


# ------------------- fused mean-pool (over seq) + final fc -------------------

def _pool_fc_kernel(x_ref, w_ref, b_ref, o_ref, acc_ref, *, seq_len):
    s = pl.program_id(0)

    @pl.when(s == 0)
    def _():
        acc_ref[...] = jnp.zeros_like(acc_ref)

    acc_ref[...] += jnp.sum(x_ref[...].astype(jnp.float32), axis=1)   # (B, D)

    @pl.when(s == pl.num_programs(0) - 1)
    def _():
        xm = (acc_ref[...] * (1.0 / seq_len)).astype(jnp.bfloat16)
        o_ref[...] = (
            jnp.dot(xm, w_ref[...], preferred_element_type=jnp.float32)
            + b_ref[...]
        ).astype(o_ref.dtype)


def pool_fc(x, w, b):
    """x:(B,S,D) bf16, w:(D,C) bf16, b:(1,C) f32 -> (B,C) f32 logits."""
    B, S, D = x.shape
    C = w.shape[1]
    ts = _pick_tile(S, (512, 256, 128, 64, 32, 16, 8))
    return pl.pallas_call(
        functools.partial(_pool_fc_kernel, seq_len=S),
        grid=(S // ts,),
        in_specs=[
            pl.BlockSpec((B, ts, D), lambda s: (0, s, 0)),
            pl.BlockSpec((D, C), lambda s: (0, 0)),
            pl.BlockSpec((1, C), lambda s: (0, 0)),
        ],
        out_specs=pl.BlockSpec((B, C), lambda s: (0, 0)),
        out_shape=jax.ShapeDtypeStruct((B, C), jnp.float32),
        scratch_shapes=[pltpu.VMEM((B, D), jnp.float32)],
        compiler_params=pltpu.CompilerParams(
            dimension_semantics=("arbitrary",),
            vmem_limit_bytes=_vmem_limit(B * ts * D * 2, D * C * 2, C * 4,
                                         B * C * 4, B * D * 4),
        ),
        cost_estimate=pl.CostEstimate(
            flops=B * S * D + 2 * B * D * C,
            transcendentals=0,
            bytes_accessed=B * S * D * 2 + D * C * 2 + C * 4 + B * C * 4,
        ),
    )(x, w, b)


# ----------------------------- model / params -------------------------------

def init_params(key, input_dim, d_model, nhead, num_layers, num_classes,
                dim_feedforward=2048, max_len=2000):
    """Deterministic synthetic parameters.  Linear weights pre-transposed (K, N), bf16."""
    keys = jax.random.split(key, 4 + num_layers)

    def dense(k, fan_in, fan_out):
        w = (jax.random.normal(k, (fan_in, fan_out), jnp.float32)
             / jnp.sqrt(jnp.float32(fan_in))).astype(jnp.bfloat16)
        b = jnp.zeros((1, fan_out), jnp.float32)
        return w, b

    emb_w, emb_b = dense(keys[0], input_dim, d_model)
    pos_enc = 0.02 * jax.random.normal(keys[1], (1, max_len, d_model), jnp.float32)
    fc_w, fc_b = dense(keys[2], d_model, num_classes)

    layers = []
    for i in range(num_layers):
        lk = jax.random.split(keys[3 + i], 4)
        in_proj_w, in_proj_b = dense(lk[0], d_model, 3 * d_model)
        out_proj_w, out_proj_b = dense(lk[1], d_model, d_model)
        lin1_w, lin1_b = dense(lk[2], d_model, dim_feedforward)
        lin2_w, lin2_b = dense(lk[3], dim_feedforward, d_model)
        layers.append(dict(
            in_proj_w=in_proj_w, in_proj_b=in_proj_b,
            out_proj_w=out_proj_w, out_proj_b=out_proj_b,
            lin1_w=lin1_w, lin1_b=lin1_b,
            lin2_w=lin2_w, lin2_b=lin2_b,
            ln1_g=jnp.ones((1, d_model), jnp.float32),
            ln1_b=jnp.zeros((1, d_model), jnp.float32),
            ln2_g=jnp.ones((1, d_model), jnp.float32),
            ln2_b=jnp.zeros((1, d_model), jnp.float32),
        ))

    return dict(emb_w=emb_w, emb_b=emb_b, pos_enc=pos_enc,
                fc_w=fc_w, fc_b=fc_b, layers=layers)


def transformer_forward(params, x, nhead):
    B, S, _ = x.shape
    d_model = params["emb_w"].shape[1]

    # embedding + positional encoding (fused; bf16 activations from here on)
    h = embed_pos(x, params["emb_w"], params["emb_b"], params["pos_enc"])

    # encoder layers (batch-first layout; equivalent to the reference's permute(1,0,2))
    for p in params["layers"]:
        h = attn_block(h, p["in_proj_w"], p["in_proj_b"],
                       p["out_proj_w"], p["out_proj_b"],
                       p["ln1_g"], p["ln1_b"], nhead)
        h = ffn_block(h.reshape(B * S, d_model),
                      p["lin1_w"], p["lin1_b"],
                      p["lin2_w"], p["lin2_b"],
                      p["ln2_g"], p["ln2_b"]).reshape(B, S, d_model)

    # mean over seq + final fc, fused in one kernel
    return pool_fc(h, params["fc_w"], params["fc_b"])


# --------------------------------- main -------------------------------------

if __name__ == "__main__":
    batch, seq = 2, 8
    input_dim, d_model, nhead, num_layers, num_classes = 16, 32, 4, 2, 5

    key = jax.random.PRNGKey(0)
    pk, xk = jax.random.split(key)
    params = init_params(pk, input_dim, d_model, nhead, num_layers, num_classes)
    x = jax.random.normal(xk, (batch, seq, input_dim), jnp.float32)

    fwd = jax.jit(functools.partial(transformer_forward, nhead=nhead))
    out = jax.block_until_ready(fwd(params, x))

    assert out.shape == (batch, num_classes)
    assert bool(jnp.all(jnp.isfinite(out)))
    print("KERNEL_OK")
</pallas_src>

<mosaic_0001>
module attributes {stable_mosaic.version = 11 : i64} {
  func.func @_embed_pos_kernel(%arg0: i32, %arg1: i32, %arg2: memref<1x8x16xf32, #tpu.memory_space<vmem>>, %arg3: memref<16x32xbf16, #tpu.memory_space<vmem>>, %arg4: memref<1x32xf32, #tpu.memory_space<vmem>>, %arg5: memref<1x8x32xf32, #tpu.memory_space<vmem>>, %arg6: memref<1x8x32xbf16, #tpu.memory_space<vmem>>) attributes {dimension_semantics = [#tpu.dimension_semantics<parallel>, #tpu.dimension_semantics<parallel>], iteration_bounds = array<i64: 2, 1>, scalar_prefetch = 0 : i64, scratch_operands = 0 : i64, tpu.core_type = #tpu.core_type<tc>, window_params = [{transform_indices = @transform_0, window_bounds = array<i64: 1, 8, 16>}, {pipeline_mode = #tpu.pipeline_mode<synchronous>, transform_indices = @transform_1, window_bounds = array<i64: 16, 32>}, {pipeline_mode = #tpu.pipeline_mode<synchronous>, transform_indices = @transform_2, window_bounds = array<i64: 1, 32>}, {transform_indices = @transform_3, window_bounds = array<i64: 1, 8, 32>}, {transform_indices = @transform_4, window_bounds = array<i64: 1, 8, 32>}]} {
    %c0 = arith.constant 0 : index
    %c0_0 = arith.constant 0 : index
    %c0_1 = arith.constant 0 : index
    %0 = vector.load %arg2[%c0, %c0_0, %c0_1] : memref<1x8x16xf32, #tpu.memory_space<vmem>>, vector<1x8x16xf32>
    %1 = vector.shape_cast %0 : vector<1x8x16xf32> to vector<8x16xf32>
    %2 = arith.truncf %1 : vector<8x16xf32> to vector<8x16xbf16>
    %c0_2 = arith.constant 0 : index
    %c0_3 = arith.constant 0 : index
    %3 = vector.load %arg3[%c0_2, %c0_3] : memref<16x32xbf16, #tpu.memory_space<vmem>>, vector<16x32xbf16>
    %cst = arith.constant dense<0.000000e+00> : vector<8x32xf32>
    %4 = tpu.matmul %2, %3, %cst {dimension_numbers = #tpu.dot_dimension_numbers<[1], [0], [0], [1], [0, 0, 1, 1], [], []>} : vector<8x16xbf16>, vector<16x32xbf16>, vector<8x32xf32> -> vector<8x32xf32>
    %c0_4 = arith.constant 0 : index
    %c0_5 = arith.constant 0 : index
    %5 = vector.load %arg4[%c0_4, %c0_5] : memref<1x32xf32, #tpu.memory_space<vmem>>, vector<1x32xf32>
    %6 = vector.broadcast %5 : vector<1x32xf32> to vector<8x32xf32>
    %7 = arith.addf %4, %6 : vector<8x32xf32>
    %c0_6 = arith.constant 0 : index
    %c0_7 = arith.constant 0 : index
    %c0_8 = arith.constant 0 : index
    %8 = vector.load %arg5[%c0_6, %c0_7, %c0_8] : memref<1x8x32xf32, #tpu.memory_space<vmem>>, vector<1x8x32xf32>
    %9 = vector.shape_cast %8 : vector<1x8x32xf32> to vector<8x32xf32>
    %10 = arith.addf %7, %9 : vector<8x32xf32>
    %11 = arith.truncf %10 : vector<8x32xf32> to vector<8x32xbf16>
    %c0_9 = arith.constant 0 : index
    %c0_10 = arith.constant 0 : index
    %c0_11 = arith.constant 0 : index
    %12 = vector.load %arg6[%c0_9, %c0_10, %c0_11] : memref<1x8x32xbf16, #tpu.memory_space<vmem>>, vector<1x8x32xbf16>
    %13 = vector.shape_cast %12 : vector<1x8x32xbf16> to vector<8x32xbf16>
    %14 = vector.shape_cast %11 : vector<8x32xbf16> to vector<1x8x32xbf16>
    tpu.vector_store %arg6[%c0_9, %c0_10, %c0_11], %14 {strides = array<i32>} : memref<1x8x32xbf16, #tpu.memory_space<vmem>>, vector<1x8x32xbf16>,
    return
  }
  func.func @transform_0(%arg0: i32, %arg1: i32) -> (i32, i32, i32) {
    %c0_i32 = arith.constant 0 : i32
    %c0_i32_0 = arith.constant 0 : i32
    return %arg0, %arg1, %c0_i32 : i32, i32, i32
  }
  func.func @transform_1(%arg0: i32, %arg1: i32) -> (i32, i32) {
    %c0_i32 = arith.constant 0 : i32
    %c0_i32_0 = arith.constant 0 : i32
    %c0_i32_1 = arith.constant 0 : i32
    return %c0_i32, %c0_i32_0 : i32, i32
  }
  func.func @transform_2(%arg0: i32, %arg1: i32) -> (i32, i32) {
    %c0_i32 = arith.constant 0 : i32
    %c0_i32_0 = arith.constant 0 : i32
    %c0_i32_1 = arith.constant 0 : i32
    return %c0_i32, %c0_i32_0 : i32, i32
  }
  func.func @transform_3(%arg0: i32, %arg1: i32) -> (i32, i32, i32) {
    %c0_i32 = arith.constant 0 : i32
    %c0_i32_0 = arith.constant 0 : i32
    %c0_i32_1 = arith.constant 0 : i32
    return %c0_i32, %arg1, %c0_i32_0 : i32, i32, i32
  }
  func.func @transform_4(%arg0: i32, %arg1: i32) -> (i32, i32, i32) {
    %c0_i32 = arith.constant 0 : i32
    %c0_i32_0 = arith.constant 0 : i32
    return %arg0, %arg1, %c0_i32 : i32, i32, i32
  }
}

module attributes {stable_mosaic.version = 11 : i64} {
  func.func @_attn_kernel(%arg0: i32, %arg1: i32, %arg2: memref<1x8x32xbf16, #tpu.memory_space<vmem>>, %arg3: memref<1x8x32xbf16, #tpu.memory_space<vmem>>, %arg4: memref<32x96xbf16, #tpu.memory_space<vmem>>, %arg5: memref<1x96xf32, #tpu.memory_space<vmem>>, %arg6: memref<32x32xbf16, #tpu.memory_space<vmem>>, %arg7: memref<1x32xf32, #tpu.memory_space<vmem>>, %arg8: memref<1x32xf32, #tpu.memory_space<vmem>>, %arg9: memref<1x32xf32, #tpu.memory_space<vmem>>, %arg10: memref<1x8x32xbf16, #tpu.memory_space<vmem>>, %arg11: memref<8x32xf32, #tpu.memory_space<vmem>>) attributes {dimension_semantics = [#tpu.dimension_semantics<parallel>, #tpu.dimension_semantics<parallel>], iteration_bounds = array<i64: 2, 1>, scalar_prefetch = 0 : i64, scratch_operands = 1 : i64, tpu.core_type = #tpu.core_type<tc>, window_params = [{transform_indices = @transform_0, window_bounds = array<i64: 1, 8, 32>}, {transform_indices = @transform_1, window_bounds = array<i64: 1, 8, 32>}, {pipeline_mode = #tpu.pipeline_mode<synchronous>, transform_indices = @transform_2, window_bounds = array<i64: 32, 96>}, {pipeline_mode = #tpu.pipeline_mode<synchronous>, transform_indices = @transform_3, window_bounds = array<i64: 1, 96>}, {pipeline_mode = #tpu.pipeline_mode<synchronous>, transform_indices = @transform_4, window_bounds = array<i64: 32, 32>}, {pipeline_mode = #tpu.pipeline_mode<synchronous>, transform_indices = @transform_5, window_bounds = array<i64: 1, 32>}, {pipeline_mode = #tpu.pipeline_mode<synchronous>, transform_indices = @transform_6, window_bounds = array<i64: 1, 32>}, {pipeline_mode = #tpu.pipeline_mode<synchronous>, transform_indices = @transform_7, window_bounds = array<i64: 1, 32>}, {transform_indices = @transform_8, window_bounds = array<i64: 1, 8, 32>}]} {
    %c0 = arith.constant 0 : index
    %c0_0 = arith.constant 0 : index
    %c0_1 = arith.constant 0 : index
    %0 = vector.load %arg2[%c0, %c0_0, %c0_1] : memref<1x8x32xbf16, #tpu.memory_space<vmem>>, vector<1x8x32xbf16>
    %1 = vector.shape_cast %0 : vector<1x8x32xbf16> to vector<8x32xbf16>
    %c0_2 = arith.constant 0 : index
    %c0_3 = arith.constant 0 : index
    %c0_4 = arith.constant 0 : index
    %2 = vector.load %arg3[%c0_2, %c0_3, %c0_4] : memref<1x8x32xbf16, #tpu.memory_space<vmem>>, vector<1x8x32xbf16>
    %3 = vector.shape_cast %2 : vector<1x8x32xbf16> to vector<8x32xbf16>
    %c0_5 = arith.constant 0 : index
    %c0_6 = arith.constant 0 : index
    %4 = vector.load %arg4[%c0_5, %c0_6] : memref<32x96xbf16, #tpu.memory_space<vmem>>, vector<32x96xbf16>
    %c0_7 = arith.constant 0 : index
    %c0_8 = arith.constant 0 : index
    %5 = vector.load %arg5[%c0_7, %c0_8] : memref<1x96xf32, #tpu.memory_space<vmem>>, vector<1x96xf32>
    %6 = vector.extract_strided_slice %4 {offsets = [0, 0], sizes = [32, 32], strides = [1, 1]} : vector<32x96xbf16> to vector<32x32xbf16>
    %cst = arith.constant dense<0.000000e+00> : vector<8x32xf32>
    %7 = tpu.matmul %1, %6, %cst {dimension_numbers = #tpu.dot_dimension_numbers<[1], [0], [0], [1], [0, 0, 1, 1], [], []>} : vector<8x32xbf16>, vector<32x32xbf16>, vector<8x32xf32> -> vector<8x32xf32>
    %8 = vector.extract_strided_slice %5 {offsets = [0, 0], sizes = [1, 32], strides = [1, 1]} : vector<1x96xf32> to vector<1x32xf32>
    %9 = vector.broadcast %8 : vector<1x32xf32> to vector<8x32xf32>
    %10 = arith.addf %7, %9 : vector<8x32xf32>
    %11 = arith.truncf %10 : vector<8x32xf32> to vector<8x32xbf16>
    %12 = vector.extract_strided_slice %4 {offsets = [0, 32], sizes = [32, 32], strides = [1, 1]} : vector<32x96xbf16> to vector<32x32xbf16>
    %cst_9 = arith.constant dense<0.000000e+00> : vector<8x32xf32>
    %13 = tpu.matmul %3, %12, %cst_9 {dimension_numbers = #tpu.dot_dimension_numbers<[1], [0], [0], [1], [0, 0, 1, 1], [], []>} : vector<8x32xbf16>, vector<32x32xbf16>, vector<8x32xf32> -> vector<8x32xf32>
    %14 = vector.extract_strided_slice %5 {offsets = [0, 32], sizes = [1, 32], strides = [1, 1]} : vector<1x96xf32> to vector<1x32xf32>
    %15 = vector.broadcast %14 : vector<1x32xf32> to vector<8x32xf32>
    %16 = arith.addf %13, %15 : vector<8x32xf32>
    %17 = arith.truncf %16 : vector<8x32xf32> to vector<8x32xbf16>
    %18 = vector.extract_strided_slice %4 {offsets = [0, 64], sizes = [32, 32], strides = [1, 1]} : vector<32x96xbf16> to vector<32x32xbf16>
    %cst_10 = arith.constant dense<0.000000e+00> : vector<8x32xf32>
    %19 = tpu.matmul %3, %18, %cst_10 {dimension_numbers = #tpu.dot_dimension_numbers<[1], [0], [0], [1], [0, 0, 1, 1], [], []>} : vector<8x32xbf16>, vector<32x32xbf16>, vector<8x32xf32> -> vector<8x32xf32>
    %20 = vector.extract_strided_slice %5 {offsets = [0, 64], sizes = [1, 32], strides = [1, 1]} : vector<1x96xf32> to vector<1x32xf32>
    %21 = vector.broadcast %20 : vector<1x32xf32> to vector<8x32xf32>
    %22 = arith.addf %19, %21 : vector<8x32xf32>
    %23 = arith.truncf %22 : vector<8x32xf32> to vector<8x32xbf16>
    %24 = vector.extract_strided_slice %11 {offsets = [0, 0], sizes = [8, 8], strides = [1, 1]} : vector<8x32xbf16> to vector<8x8xbf16>
    %25 = vector.extract_strided_slice %17 {offsets = [0, 0], sizes = [8, 8], strides = [1, 1]} : vector<8x32xbf16> to vector<8x8xbf16>
    %26 = vector.extract_strided_slice %23 {offsets = [0, 0], sizes = [8, 8], strides = [1, 1]} : vector<8x32xbf16> to vector<8x8xbf16>
    %cst_11 = arith.constant dense<0.000000e+00> : vector<8x8xf32>
    %27 = tpu.matmul %24, %25, %cst_11 {dimension_numbers = #tpu.dot_dimension_numbers<[1], [1], [0], [0], [0, 0, 1, 0], [], []>} : vector<8x8xbf16>, vector<8x8xbf16>, vector<8x8xf32> -> vector<8x8xf32>
    %cst_12 = arith.constant 0.353553385 : f32
    %28 = vector.broadcast %cst_12 : f32 to vector<8x8xf32>
    %29 = arith.mulf %27, %28 : vector<8x8xf32>
    %cst_13 = arith.constant dense<0xFF800000> : vector<8xf32>
    %30 = vector.multi_reduction <maximumf>, %29, %cst_13 [1] : vector<8x8xf32> to vector<8xf32>
    %31 = vector.shape_cast %30 : vector<8xf32> to vector<8x1xf32>
    %32 = vector.broadcast %31 : vector<8x1xf32> to vector<8x8xf32>
    %33 = arith.subf %29, %32 : vector<8x8xf32>
    %34 = math.exp %33 : vector<8x8xf32>
    %cst_14 = arith.constant dense<0.000000e+00> : vector<8xf32>
    %35 = vector.multi_reduction <add>, %34, %cst_14 [1] : vector<8x8xf32> to vector<8xf32>
    %36 = vector.shape_cast %35 : vector<8xf32> to vector<8x1xf32>
    %37 = tpu.reciprocal %36 {approx = true} : vector<8x1xf32> -> vector<8x1xf32>
    %38 = vector.broadcast %37 : vector<8x1xf32> to vector<8x8xf32>
    %39 = arith.mulf %34, %38 : vector<8x8xf32>
    %40 = arith.truncf %39 : vector<8x8xf32> to vector<8x8xbf16>
    %cst_15 = arith.constant dense<0.000000e+00> : vector<8x8xf32>
    %41 = tpu.matmul %40, %26, %cst_15 {dimension_numbers = #tpu.dot_dimension_numbers<[1], [0], [0], [1], [0, 0, 1, 1], [], []>} : vector<8x8xbf16>, vector<8x8xbf16>, vector<8x8xf32> -> vector<8x8xf32>
    %c0_16 = arith.constant 0 : index
    %c0_17 = arith.constant 0 : index
    %42 = vector.load %arg11[%c0_16, %c0_17] : memref<8x32xf32, #tpu.memory_space<vmem>>, vector<8x8xf32>
    tpu.vector_store %arg11[%c0_16, %c0_17], %41 {strides = array<i32>} : memref<8x32xf32, #tpu.memory_space<vmem>>, vector<8x8xf32>,
    %43 = vector.extract_strided_slice %11 {offsets = [0, 8], sizes = [8, 8], strides = [1, 1]} : vector<8x32xbf16> to vector<8x8xbf16>
    %44 = vector.extract_strided_slice %17 {offsets = [0, 8], sizes = [8, 8], strides = [1, 1]} : vector<8x32xbf16> to vector<8x8xbf16>
    %45 = vector.extract_strided_slice %23 {offsets = [0, 8], sizes = [8, 8], strides = [1, 1]} : vector<8x32xbf16> to vector<8x8xbf16>
    %cst_18 = arith.constant dense<0.000000e+00> : vector<8x8xf32>
    %46 = tpu.matmul %43, %44, %cst_18 {dimension_numbers = #tpu.dot_dimension_numbers<[1], [1], [0], [0], [0, 0, 1, 0], [], []>} : vector<8x8xbf16>, vector<8x8xbf16>, vector<8x8xf32> -> vector<8x8xf32>
    %cst_19 = arith.constant 0.353553385 : f32
    %47 = vector.broadcast %cst_19 : f32 to vector<8x8xf32>
    %48 = arith.mulf %46, %47 : vector<8x8xf32>
    %cst_20 = arith.constant dense<0xFF800000> : vector<8xf32>
    %49 = vector.multi_reduction <maximumf>, %48, %cst_20 [1] : vector<8x8xf32> to vector<8xf32>
    %50 = vector.shape_cast %49 : vector<8xf32> to vector<8x1xf32>
    %51 = vector.broadcast %50 : vector<8x1xf32> to vector<8x8xf32>
    %52 = arith.subf %48, %51 : vector<8x8xf32>
    %53 = math.exp %52 : vector<8x8xf32>
    %cst_21 = arith.constant dense<0.000000e+00> : vector<8xf32>
    %54 = vector.multi_reduction <add>, %53, %cst_21 [1] : vector<8x8xf32> to vector<8xf32>
    %55 = vector.shape_cast %54 : vector<8xf32> to vector<8x1xf32>
    %56 = tpu.reciprocal %55 {approx = true} : vector<8x1xf32> -> vector<8x1xf32>
    %57 = vector.broadcast %56 : vector<8x1xf32> to vector<8x8xf32>
    %58 = arith.mulf %53, %57 : vector<8x8xf32>
    %59 = arith.truncf %58 : vector<8x8xf32> to vector<8x8xbf16>
    %cst_22 = arith.constant dense<0.000000e+00> : vector<8x8xf32>
    %60 = tpu.matmul %59, %45, %cst_22 {dimension_numbers = #tpu.dot_dimension_numbers<[1], [0], [0], [1], [0, 0, 1, 1], [], []>} : vector<8x8xbf16>, vector<8x8xbf16>, vector<8x8xf32> -> vector<8x8xf32>
    %c0_23 = arith.constant 0 : index
    %c8 = arith.constant 8 : index
    %61 = vector.load %arg11[%c0_23, %c8] : memref<8x32xf32, #tpu.memory_space<vmem>>, vector<8x8xf32>
    tpu.vector_store %arg11[%c0_23, %c8], %60 {strides = array<i32>} : memref<8x32xf32, #tpu.memory_space<vmem>>, vector<8x8xf32>,
    %62 = vector.extract_strided_slice %11 {offsets = [0, 16], sizes = [8, 8], strides = [1, 1]} : vector<8x32xbf16> to vector<8x8xbf16>
    %63 = vector.extract_strided_slice %17 {offsets = [0, 16], sizes = [8, 8], strides = [1, 1]} : vector<8x32xbf16> to vector<8x8xbf16>
    %64 = vector.extract_strided_slice %23 {offsets = [0, 16], sizes = [8, 8], strides = [1, 1]} : vector<8x32xbf16> to vector<8x8xbf16>
    %cst_24 = arith.constant dense<0.000000e+00> : vector<8x8xf32>
    %65 = tpu.matmul %62, %63, %cst_24 {dimension_numbers = #tpu.dot_dimension_numbers<[1], [1], [0], [0], [0, 0, 1, 0], [], []>} : vector<8x8xbf16>, vector<8x8xbf16>, vector<8x8xf32> -> vector<8x8xf32>
    %cst_25 = arith.constant 0.353553385 : f32
    %66 = vector.broadcast %cst_25 : f32 to vector<8x8xf32>
    %67 = arith.mulf %65, %66 : vector<8x8xf32>
    %cst_26 = arith.constant dense<0xFF800000> : vector<8xf32>
    %68 = vector.multi_reduction <maximumf>, %67, %cst_26 [1] : vector<8x8xf32> to vector<8xf32>
    %69 = vector.shape_cast %68 : vector<8xf32> to vector<8x1xf32>
    %70 = vector.broadcast %69 : vector<8x1xf32> to vector<8x8xf32>
    %71 = arith.subf %67, %70 : vector<8x8xf32>
    %72 = math.exp %71 : vector<8x8xf32>
    %cst_27 = arith.constant dense<0.000000e+00> : vector<8xf32>
    %73 = vector.multi_reduction <add>, %72, %cst_27 [1] : vector<8x8xf32> to vector<8xf32>
    %74 = vector.shape_cast %73 : vector<8xf32> to vector<8x1xf32>
    %75 = tpu.reciprocal %74 {approx = true} : vector<8x1xf32> -> vector<8x1xf32>
    %76 = vector.broadcast %75 : vector<8x1xf32> to vector<8x8xf32>
    %77 = arith.mulf %72, %76 : vector<8x8xf32>
    %78 = arith.truncf %77 : vector<8x8xf32> to vector<8x8xbf16>
    %cst_28 = arith.constant dense<0.000000e+00> : vector<8x8xf32>
    %79 = tpu.matmul %78, %64, %cst_28 {dimension_numbers = #tpu.dot_dimension_numbers<[1], [0], [0], [1], [0, 0, 1, 1], [], []>} : vector<8x8xbf16>, vector<8x8xbf16>, vector<8x8xf32> -> vector<8x8xf32>
    %c0_29 = arith.constant 0 : index
    %c16 = arith.constant 16 : index
    %80 = vector.load %arg11[%c0_29, %c16] : memref<8x32xf32, #tpu.memory_space<vmem>>, vector<8x8xf32>
    tpu.vector_store %arg11[%c0_29, %c16], %79 {strides = array<i32>} : memref<8x32xf32, #tpu.memory_space<vmem>>, vector<8x8xf32>,
    %81 = vector.extract_strided_slice %11 {offsets = [0, 24], sizes = [8, 8], strides = [1, 1]} : vector<8x32xbf16> to vector<8x8xbf16>
    %82 = vector.extract_strided_slice %17 {offsets = [0, 24], sizes = [8, 8], strides = [1, 1]} : vector<8x32xbf16> to vector<8x8xbf16>
    %83 = vector.extract_strided_slice %23 {offsets = [0, 24], sizes = [8, 8], strides = [1, 1]} : vector<8x32xbf16> to vector<8x8xbf16>
    %cst_30 = arith.constant dense<0.000000e+00> : vector<8x8xf32>
    %84 = tpu.matmul %81, %82, %cst_30 {dimension_numbers = #tpu.dot_dimension_numbers<[1], [1], [0], [0], [0, 0, 1, 0], [], []>} : vector<8x8xbf16>, vector<8x8xbf16>, vector<8x8xf32> -> vector<8x8xf32>
    %cst_31 = arith.constant 0.353553385 : f32
    %85 = vector.broadcast %cst_31 : f32 to vector<8x8xf32>
    %86 = arith.mulf %84, %85 : vector<8x8xf32>
    %cst_32 = arith.constant dense<0xFF800000> : vector<8xf32>
    %87 = vector.multi_reduction <maximumf>, %86, %cst_32 [1] : vector<8x8xf32> to vector<8xf32>
    %88 = vector.shape_cast %87 : vector<8xf32> to vector<8x1xf32>
    %89 = vector.broadcast %88 : vector<8x1xf32> to vector<8x8xf32>
    %90 = arith.subf %86, %89 : vector<8x8xf32>
    %91 = math.exp %90 : vector<8x8xf32>
    %cst_33 = arith.constant dense<0.000000e+00> : vector<8xf32>
    %92 = vector.multi_reduction <add>, %91, %cst_33 [1] : vector<8x8xf32> to vector<8xf32>
    %93 = vector.shape_cast %92 : vector<8xf32> to vector<8x1xf32>
    %94 = tpu.reciprocal %93 {approx = true} : vector<8x1xf32> -> vector<8x1xf32>
    %95 = vector.broadcast %94 : vector<8x1xf32> to vector<8x8xf32>
    %96 = arith.mulf %91, %95 : vector<8x8xf32>
    %97 = arith.truncf %96 : vector<8x8xf32> to vector<8x8xbf16>
    %cst_34 = arith.constant dense<0.000000e+00> : vector<8x8xf32>
    %98 = tpu.matmul %97, %83, %cst_34 {dimension_numbers = #tpu.dot_dimension_numbers<[1], [0], [0], [1], [0, 0, 1, 1], [], []>} : vector<8x8xbf16>, vector<8x8xbf16>, vector<8x8xf32> -> vector<8x8xf32>
    %c0_35 = arith.constant 0 : index
    %c24 = arith.constant 24 : index
    %99 = vector.load %arg11[%c0_35, %c24] : memref<8x32xf32, #tpu.memory_space<vmem>>, vector<8x8xf32>
    tpu.vector_store %arg11[%c0_35, %c24], %98 {strides = array<i32>} : memref<8x32xf32, #tpu.memory_space<vmem>>, vector<8x8xf32>,
    %c0_36 = arith.constant 0 : index
    %c0_37 = arith.constant 0 : index
    %100 = vector.load %arg11[%c0_36, %c0_37] : memref<8x32xf32, #tpu.memory_space<vmem>>, vector<8x32xf32>
    %101 = arith.truncf %100 : vector<8x32xf32> to vector<8x32xbf16>
    %c0_38 = arith.constant 0 : index
    %c0_39 = arith.constant 0 : index
    %102 = vector.load %arg6[%c0_38, %c0_39] : memref<32x32xbf16, #tpu.memory_space<vmem>>, vector<32x32xbf16>
    %cst_40 = arith.constant dense<0.000000e+00> : vector<8x32xf32>
    %103 = tpu.matmul %101, %102, %cst_40 {dimension_numbers = #tpu.dot_dimension_numbers<[1], [0], [0], [1], [0, 0, 1, 1], [], []>} : vector<8x32xbf16>, vector<32x32xbf16>, vector<8x32xf32> -> vector<8x32xf32>
    %c0_41 = arith.constant 0 : index
    %c0_42 = arith.constant 0 : index
    %104 = vector.load %arg7[%c0_41, %c0_42] : memref<1x32xf32, #tpu.memory_space<vmem>>, vector<1x32xf32>
    %105 = vector.broadcast %104 : vector<1x32xf32> to vector<8x32xf32>
    %106 = arith.addf %103, %105 : vector<8x32xf32>
    %107 = arith.extf %1 : vector<8x32xbf16> to vector<8x32xf32>
    %108 = arith.addf %107, %106 : vector<8x32xf32>
    %cst_43 = arith.constant dense<0.000000e+00> : vector<8xf32>
    %109 = vector.multi_reduction <add>, %108, %cst_43 [1] : vector<8x32xf32> to vector<8xf32>
    %110 = vector.shape_cast %109 : vector<8xf32> to vector<8x1xf32>
    %cst_44 = arith.constant 3.200000e+01 : f32
    %111 = vector.broadcast %cst_44 : f32 to vector<8x1xf32>
    %112 = arith.divf %110, %111 : vector<8x1xf32>
    %113 = vector.broadcast %112 : vector<8x1xf32> to vector<8x32xf32>
    %114 = arith.subf %108, %113 : vector<8x32xf32>
    %115 = arith.mulf %114, %114 : vector<8x32xf32>
    %cst_45 = arith.constant dense<0.000000e+00> : vector<8xf32>
    %116 = vector.multi_reduction <add>, %115, %cst_45 [1] : vector<8x32xf32> to vector<8xf32>
    %117 = vector.shape_cast %116 : vector<8xf32> to vector<8x1xf32>
    %cst_46 = arith.constant 3.200000e+01 : f32
    %118 = vector.broadcast %cst_46 : f32 to vector<8x1xf32>
    %119 = arith.divf %117, %118 : vector<8x1xf32>
    %cst_47 = arith.constant 9.99999974E-6 : f32
    %120 = vector.broadcast %cst_47 : f32 to vector<8x1xf32>
    %121 = arith.addf %119, %120 : vector<8x1xf32>
    %122 = math.rsqrt %121 : vector<8x1xf32>
    %123 = vector.broadcast %122 : vector<8x1xf32> to vector<8x32xf32>
    %124 = arith.mulf %114, %123 : vector<8x32xf32>
    %c0_48 = arith.constant 0 : index
    %c0_49 = arith.constant 0 : index
    %125 = vector.load %arg8[%c0_48, %c0_49] : memref<1x32xf32, #tpu.memory_space<vmem>>, vector<1x32xf32>
    %126 = vector.broadcast %125 : vector<1x32xf32> to vector<8x32xf32>
    %127 = arith.mulf %124, %126 : vector<8x32xf32>
    %c0_50 = arith.constant 0 : index
    %c0_51 = arith.constant 0 : index
    %128 = vector.load %arg9[%c0_50, %c0_51] : memref<1x32xf32, #tpu.memory_space<vmem>>, vector<1x32xf32>
    %129 = vector.broadcast %128 : vector<1x32xf32> to vector<8x32xf32>
    %130 = arith.addf %127, %129 : vector<8x32xf32>
    %131 = arith.truncf %130 : vector<8x32xf32> to vector<8x32xbf16>
    %c0_52 = arith.constant 0 : index
    %c0_53 = arith.constant 0 : index
    %c0_54 = arith.constant 0 : index
    %132 = vector.load %arg10[%c0_52, %c0_53, %c0_54] : memref<1x8x32xbf16, #tpu.memory_space<vmem>>, vector<1x8x32xbf16>
    %133 = vector.shape_cast %132 : vector<1x8x32xbf16> to vector<8x32xbf16>
    %134 = vector.shape_cast %131 : vector<8x32xbf16> to vector<1x8x32xbf16>
    tpu.vector_store %arg10[%c0_52, %c0_53, %c0_54], %134 {strides = array<i32>} : memref<1x8x32xbf16, #tpu.memory_space<vmem>>, vector<1x8x32xbf16>,
    return
  }
  func.func @transform_0(%arg0: i32, %arg1: i32) -> (i32, i32, i32) {
    %c0_i32 = arith.constant 0 : i32
    %c0_i32_0 = arith.constant 0 : i32
    return %arg0, %arg1, %c0_i32 : i32, i32, i32
  }
  func.func @transform_1(%arg0: i32, %arg1: i32) -> (i32, i32, i32) {
    %c0_i32 = arith.constant 0 : i32
    %c0_i32_0 = arith.constant 0 : i32
    %c0_i32_1 = arith.constant 0 : i32
    return %arg0, %c0_i32, %c0_i32_0 : i32, i32, i32
  }
  func.func @transform_2(%arg0: i32, %arg1: i32) -> (i32, i32) {
    %c0_i32 = arith.constant 0 : i32
    %c0_i32_0 = arith.constant 0 : i32
    %c0_i32_1 = arith.constant 0 : i32
    return %c0_i32, %c0_i32_0 : i32, i32
  }
  func.func @transform_3(%arg0: i32, %arg1: i32) -> (i32, i32) {
    %c0_i32 = arith.constant 0 : i32
    %c0_i32_0 = arith.constant 0 : i32
    %c0_i32_1 = arith.constant 0 : i32
    return %c0_i32, %c0_i32_0 : i32, i32
  }
  func.func @transform_4(%arg0: i32, %arg1: i32) -> (i32, i32) {
    %c0_i32 = arith.constant 0 : i32
    %c0_i32_0 = arith.constant 0 : i32
    %c0_i32_1 = arith.constant 0 : i32
    return %c0_i32, %c0_i32_0 : i32, i32
  }
  func.func @transform_5(%arg0: i32, %arg1: i32) -> (i32, i32) {
    %c0_i32 = arith.constant 0 : i32
    %c0_i32_0 = arith.constant 0 : i32
    %c0_i32_1 = arith.constant 0 : i32
    return %c0_i32, %c0_i32_0 : i32, i32
  }
  func.func @transform_6(%arg0: i32, %arg1: i32) -> (i32, i32) {
    %c0_i32 = arith.constant 0 : i32
    %c0_i32_0 = arith.constant 0 : i32
    %c0_i32_1 = arith.constant 0 : i32
    return %c0_i32, %c0_i32_0 : i32, i32
  }
  func.func @transform_7(%arg0: i32, %arg1: i32) -> (i32, i32) {
    %c0_i32 = arith.constant 0 : i32
    %c0_i32_0 = arith.constant 0 : i32
    %c0_i32_1 = arith.constant 0 : i32
    return %c0_i32, %c0_i32_0 : i32, i32
  }
  func.func @transform_8(%arg0: i32, %arg1: i32) -> (i32, i32, i32) {
    %c0_i32 = arith.constant 0 : i32
    %c0_i32_0 = arith.constant 0 : i32
    return %arg0, %arg1, %c0_i32 : i32, i32, i32
  }
}

module attributes {stable_mosaic.version = 11 : i64} {
  func.func @_ffn_kernel(%arg0: i32, %arg1: memref<16x32xbf16, #tpu.memory_space<vmem>>, %arg2: memref<32x2048xbf16, #tpu.memory_space<vmem>>, %arg3: memref<1x2048xf32, #tpu.memory_space<vmem>>, %arg4: memref<2048x32xbf16, #tpu.memory_space<vmem>>, %arg5: memref<1x32xf32, #tpu.memory_space<vmem>>, %arg6: memref<1x32xf32, #tpu.memory_space<vmem>>, %arg7: memref<1x32xf32, #tpu.memory_space<vmem>>, %arg8: memref<16x32xbf16, #tpu.memory_space<vmem>>) attributes {dimension_semantics = [#tpu.dimension_semantics<parallel>], iteration_bounds = array<i64: 1>, scalar_prefetch = 0 : i64, scratch_operands = 0 : i64, tpu.core_type = #tpu.core_type<tc>, window_params = [{transform_indices = @transform_0, window_bounds = array<i64: 16, 32>}, {pipeline_mode = #tpu.pipeline_mode<synchronous>, transform_indices = @transform_1, window_bounds = array<i64: 32, 2048>}, {pipeline_mode = #tpu.pipeline_mode<synchronous>, transform_indices = @transform_2, window_bounds = array<i64: 1, 2048>}, {pipeline_mode = #tpu.pipeline_mode<synchronous>, transform_indices = @transform_3, window_bounds = array<i64: 2048, 32>}, {pipeline_mode = #tpu.pipeline_mode<synchronous>, transform_indices = @transform_4, window_bounds = array<i64: 1, 32>}, {pipeline_mode = #tpu.pipeline_mode<synchronous>, transform_indices = @transform_5, window_bounds = array<i64: 1, 32>}, {pipeline_mode = #tpu.pipeline_mode<synchronous>, transform_indices = @transform_6, window_bounds = array<i64: 1, 32>}, {transform_indices = @transform_7, window_bounds = array<i64: 16, 32>}]} {
    %c0 = arith.constant 0 : index
    %c0_0 = arith.constant 0 : index
    %0 = vector.load %arg1[%c0, %c0_0] : memref<16x32xbf16, #tpu.memory_space<vmem>>, vector<16x32xbf16>
    %c0_1 = arith.constant 0 : index
    %c0_2 = arith.constant 0 : index
    %1 = vector.load %arg2[%c0_1, %c0_2] : memref<32x2048xbf16, #tpu.memory_space<vmem>>, vector<32x2048xbf16>
    %cst = arith.constant dense<0.000000e+00> : vector<16x2048xf32>
    %2 = tpu.matmul %0, %1, %cst {dimension_numbers = #tpu.dot_dimension_numbers<[1], [0], [0], [1], [0, 0, 1, 1], [], []>} : vector<16x32xbf16>, vector<32x2048xbf16>, vector<16x2048xf32> -> vector<16x2048xf32>
    %c0_3 = arith.constant 0 : index
    %c0_4 = arith.constant 0 : index
    %3 = vector.load %arg3[%c0_3, %c0_4] : memref<1x2048xf32, #tpu.memory_space<vmem>>, vector<1x2048xf32>
    %4 = vector.broadcast %3 : vector<1x2048xf32> to vector<16x2048xf32>
    %5 = arith.addf %2, %4 : vector<16x2048xf32>
    %cst_5 = arith.constant 0.000000e+00 : f32
    %6 = vector.broadcast %cst_5 : f32 to vector<16x2048xf32>
    %7 = arith.maximumf %5, %6 : vector<16x2048xf32>
    %8 = arith.truncf %7 : vector<16x2048xf32> to vector<16x2048xbf16>
    %c0_6 = arith.constant 0 : index
    %c0_7 = arith.constant 0 : index
    %9 = vector.load %arg4[%c0_6, %c0_7] : memref<2048x32xbf16, #tpu.memory_space<vmem>>, vector<2048x32xbf16>
    %cst_8 = arith.constant dense<0.000000e+00> : vector<16x32xf32>
    %10 = tpu.matmul %8, %9, %cst_8 {dimension_numbers = #tpu.dot_dimension_numbers<[1], [0], [0], [1], [0, 0, 1, 1], [], []>} : vector<16x2048xbf16>, vector<2048x32xbf16>, vector<16x32xf32> -> vector<16x32xf32>
    %c0_9 = arith.constant 0 : index
    %c0_10 = arith.constant 0 : index
    %11 = vector.load %arg5[%c0_9, %c0_10] : memref<1x32xf32, #tpu.memory_space<vmem>>, vector<1x32xf32>
    %12 = vector.broadcast %11 : vector<1x32xf32> to vector<16x32xf32>
    %13 = arith.addf %10, %12 : vector<16x32xf32>
    %14 = arith.extf %0 : vector<16x32xbf16> to vector<16x32xf32>
    %15 = arith.addf %14, %13 : vector<16x32xf32>
    %cst_11 = arith.constant dense<0.000000e+00> : vector<16xf32>
    %16 = vector.multi_reduction <add>, %15, %cst_11 [1] : vector<16x32xf32> to vector<16xf32>
    %17 = vector.shape_cast %16 : vector<16xf32> to vector<16x1xf32>
    %cst_12 = arith.constant 3.200000e+01 : f32
    %18 = vector.broadcast %cst_12 : f32 to vector<16x1xf32>
    %19 = arith.divf %17, %18 : vector<16x1xf32>
    %20 = vector.broadcast %19 : vector<16x1xf32> to vector<16x32xf32>
    %21 = arith.subf %15, %20 : vector<16x32xf32>
    %22 = arith.mulf %21, %21 : vector<16x32xf32>
    %cst_13 = arith.constant dense<0.000000e+00> : vector<16xf32>
    %23 = vector.multi_reduction <add>, %22, %cst_13 [1] : vector<16x32xf32> to vector<16xf32>
    %24 = vector.shape_cast %23 : vector<16xf32> to vector<16x1xf32>
    %cst_14 = arith.constant 3.200000e+01 : f32
    %25 = vector.broadcast %cst_14 : f32 to vector<16x1xf32>
    %26 = arith.divf %24, %25 : vector<16x1xf32>
    %cst_15 = arith.constant 9.99999974E-6 : f32
    %27 = vector.broadcast %cst_15 : f32 to vector<16x1xf32>
    %28 = arith.addf %26, %27 : vector<16x1xf32>
    %29 = math.rsqrt %28 : vector<16x1xf32>
    %30 = vector.broadcast %29 : vector<16x1xf32> to vector<16x32xf32>
    %31 = arith.mulf %21, %30 : vector<16x32xf32>
    %c0_16 = arith.constant 0 : index
    %c0_17 = arith.constant 0 : index
    %32 = vector.load %arg6[%c0_16, %c0_17] : memref<1x32xf32, #tpu.memory_space<vmem>>, vector<1x32xf32>
    %33 = vector.broadcast %32 : vector<1x32xf32> to vector<16x32xf32>
    %34 = arith.mulf %31, %33 : vector<16x32xf32>
    %c0_18 = arith.constant 0 : index
    %c0_19 = arith.constant 0 : index
    %35 = vector.load %arg7[%c0_18, %c0_19] : memref<1x32xf32, #tpu.memory_space<vmem>>, vector<1x32xf32>
    %36 = vector.broadcast %35 : vector<1x32xf32> to vector<16x32xf32>
    %37 = arith.addf %34, %36 : vector<16x32xf32>
    %38 = arith.truncf %37 : vector<16x32xf32> to vector<16x32xbf16>
    %c0_20 = arith.constant 0 : index
    %c0_21 = arith.constant 0 : index
    %39 = vector.load %arg8[%c0_20, %c0_21] : memref<16x32xbf16, #tpu.memory_space<vmem>>, vector<16x32xbf16>
    tpu.vector_store %arg8[%c0_20, %c0_21], %38 {strides = array<i32>} : memref<16x32xbf16, #tpu.memory_space<vmem>>, vector<16x32xbf16>,
    return
  }
  func.func @transform_0(%arg0: i32) -> (i32, i32) {
    %c0_i32 = arith.constant 0 : i32
    %c0_i32_0 = arith.constant 0 : i32
    return %arg0, %c0_i32 : i32, i32
  }
  func.func @transform_1(%arg0: i32) -> (i32, i32) {
    %c0_i32 = arith.constant 0 : i32
    %c0_i32_0 = arith.constant 0 : i32
    %c0_i32_1 = arith.constant 0 : i32
    return %c0_i32, %c0_i32_0 : i32, i32
  }
  func.func @transform_2(%arg0: i32) -> (i32, i32) {
    %c0_i32 = arith.constant 0 : i32
    %c0_i32_0 = arith.constant 0 : i32
    %c0_i32_1 = arith.constant 0 : i32
    return %c0_i32, %c0_i32_0 : i32, i32
  }
  func.func @transform_3(%arg0: i32) -> (i32, i32) {
    %c0_i32 = arith.constant 0 : i32
    %c0_i32_0 = arith.constant 0 : i32
    %c0_i32_1 = arith.constant 0 : i32
    return %c0_i32, %c0_i32_0 : i32, i32
  }
  func.func @transform_4(%arg0: i32) -> (i32, i32) {
    %c0_i32 = arith.constant 0 : i32
    %c0_i32_0 = arith.constant 0 : i32
    %c0_i32_1 = arith.constant 0 : i32
    return %c0_i32, %c0_i32_0 : i32, i32
  }
  func.func @transform_5(%arg0: i32) -> (i32, i32) {
    %c0_i32 = arith.constant 0 : i32
    %c0_i32_0 = arith.constant 0 : i32
    %c0_i32_1 = arith.constant 0 : i32
    return %c0_i32, %c0_i32_0 : i32, i32
  }
  func.func @transform_6(%arg0: i32) -> (i32, i32) {
    %c0_i32 = arith.constant 0 : i32
    %c0_i32_0 = arith.constant 0 : i32
    %c0_i32_1 = arith.constant 0 : i32
    return %c0_i32, %c0_i32_0 : i32, i32
  }
  func.func @transform_7(%arg0: i32) -> (i32, i32) {
    %c0_i32 = arith.constant 0 : i32
    %c0_i32_0 = arith.constant 0 : i32
    return %arg0, %c0_i32 : i32, i32
  }
}

module attributes {stable_mosaic.version = 11 : i64} {
  func.func @_pool_fc_kernel(%arg0: i32, %arg1: memref<2x8x32xbf16, #tpu.memory_space<vmem>>, %arg2: memref<32x5xbf16, #tpu.memory_space<vmem>>, %arg3: memref<1x5xf32, #tpu.memory_space<vmem>>, %arg4: memref<2x5xf32, #tpu.memory_space<vmem>>, %arg5: memref<2x32xf32, #tpu.memory_space<vmem>>) attributes {dimension_semantics = [#tpu.dimension_semantics<arbitrary>], iteration_bounds = array<i64: 1>, scalar_prefetch = 0 : i64, scratch_operands = 1 : i64, tpu.core_type = #tpu.core_type<tc>, window_params = [{transform_indices = @transform_0, window_bounds = array<i64: 2, 8, 32>}, {pipeline_mode = #tpu.pipeline_mode<synchronous>, transform_indices = @transform_1, window_bounds = array<i64: 32, 5>}, {pipeline_mode = #tpu.pipeline_mode<synchronous>, transform_indices = @transform_2, window_bounds = array<i64: 1, 5>}, {pipeline_mode = #tpu.pipeline_mode<synchronous>, transform_indices = @transform_3, window_bounds = array<i64: 2, 5>}]} {
    %c0_i32 = arith.constant 0 : i32
    %0 = arith.cmpi eq, %arg0, %c0_i32 : i32
    %1 = arith.extui %0 : i1 to i32
    %c0_i32_0 = arith.constant 0 : i32
    %2 = arith.cmpi ne, %1, %c0_i32_0 : i32
    scf.if %2 {
      %cst_9 = arith.constant 0.000000e+00 : f32
      %12 = vector.broadcast %cst_9 : f32 to vector<2x32xf32>
      %c0_10 = arith.constant 0 : index
      %c0_11 = arith.constant 0 : index
      %13 = vector.load %arg5[%c0_10, %c0_11] : memref<2x32xf32, #tpu.memory_space<vmem>>, vector<2x32xf32>
      tpu.vector_store %arg5[%c0_10, %c0_11], %12 {strides = array<i32>} : memref<2x32xf32, #tpu.memory_space<vmem>>, vector<2x32xf32>,
    } else {
    }
    %c0 = arith.constant 0 : index
    %c0_1 = arith.constant 0 : index
    %3 = vector.load %arg5[%c0, %c0_1] : memref<2x32xf32, #tpu.memory_space<vmem>>, vector<2x32xf32>
    %c0_2 = arith.constant 0 : index
    %c0_3 = arith.constant 0 : index
    %c0_4 = arith.constant 0 : index
    %4 = vector.load %arg1[%c0_2, %c0_3, %c0_4] : memref<2x8x32xbf16, #tpu.memory_space<vmem>>, vector<2x8x32xbf16>
    %5 = arith.extf %4 : vector<2x8x32xbf16> to vector<2x8x32xf32>
    %cst = arith.constant dense<0.000000e+00> : vector<2x32xf32>
    %6 = vector.multi_reduction <add>, %5, %cst [1] : vector<2x8x32xf32> to vector<2x32xf32>
    %7 = arith.addf %3, %6 : vector<2x32xf32>
    %c0_5 = arith.constant 0 : index
    %c0_6 = arith.constant 0 : index
    %8 = vector.load %arg5[%c0_5, %c0_6] : memref<2x32xf32, #tpu.memory_space<vmem>>, vector<2x32xf32>
    tpu.vector_store %arg5[%c0_5, %c0_6], %7 {strides = array<i32>} : memref<2x32xf32, #tpu.memory_space<vmem>>, vector<2x32xf32>,
    %c0_i32_7 = arith.constant 0 : i32
    %9 = arith.cmpi eq, %arg0, %c0_i32_7 : i32
    %10 = arith.extui %9 : i1 to i32
    %c0_i32_8 = arith.constant 0 : i32
    %11 = arith.cmpi ne, %10, %c0_i32_8 : i32
    scf.if %11 {
      %c0_9 = arith.constant 0 : index
      %c0_10 = arith.constant 0 : index
      %12 = vector.load %arg5[%c0_9, %c0_10] : memref<2x32xf32, #tpu.memory_space<vmem>>, vector<2x32xf32>
      %cst_11 = arith.constant 1.250000e-01 : f32
      %13 = vector.broadcast %cst_11 : f32 to vector<2x32xf32>
      %14 = arith.mulf %12, %13 : vector<2x32xf32>
      %15 = arith.truncf %14 : vector<2x32xf32> to vector<2x32xbf16>
      %c0_12 = arith.constant 0 : index
      %c0_13 = arith.constant 0 : index
      %16 = vector.load %arg2[%c0_12, %c0_13] : memref<32x5xbf16, #tpu.memory_space<vmem>>, vector<32x5xbf16>
      %cst_14 = arith.constant dense<0.000000e+00> : vector<2x5xf32>
      %17 = tpu.matmul %15, %16, %cst_14 {dimension_numbers = #tpu.dot_dimension_numbers<[1], [0], [0], [1], [0, 0, 1, 1], [], []>} : vector<2x32xbf16>, vector<32x5xbf16>, vector<2x5xf32> -> vector<2x5xf32>
      %c0_15 = arith.constant 0 : index
      %c0_16 = arith.constant 0 : index
      %18 = vector.load %arg3[%c0_15, %c0_16] : memref<1x5xf32, #tpu.memory_space<vmem>>, vector<1x5xf32>
      %19 = vector.broadcast %18 : vector<1x5xf32> to vector<2x5xf32>
      %20 = arith.addf %17, %19 : vector<2x5xf32>
      %c0_17 = arith.constant 0 : index
      %c0_18 = arith.constant 0 : index
      %21 = vector.load %arg4[%c0_17, %c0_18] : memref<2x5xf32, #tpu.memory_space<vmem>>, vector<2x5xf32>
      tpu.vector_store %arg4[%c0_17, %c0_18], %20 {strides = array<i32>} : memref<2x5xf32, #tpu.memory_space<vmem>>, vector<2x5xf32>,
    } else {
    }
    return
  }
  func.func @transform_0(%arg0: i32) -> (i32, i32, i32) {
    %c0_i32 = arith.constant 0 : i32
    %c0_i32_0 = arith.constant 0 : i32
    %c0_i32_1 = arith.constant 0 : i32
    return %c0_i32, %arg0, %c0_i32_0 : i32, i32, i32
  }
  func.func @transform_1(%arg0: i32) -> (i32, i32) {
    %c0_i32 = arith.constant 0 : i32
    %c0_i32_0 = arith.constant 0 : i32
    %c0_i32_1 = arith.constant 0 : i32
    return %c0_i32, %c0_i32_0 : i32, i32
  }
  func.func @transform_2(%arg0: i32) -> (i32, i32) {
    %c0_i32 = arith.constant 0 : i32
    %c0_i32_0 = arith.constant 0 : i32
    %c0_i32_1 = arith.constant 0 : i32
    return %c0_i32, %c0_i32_0 : i32, i32
  }
  func.func @transform_3(%arg0: i32) -> (i32, i32) {
    %c0_i32 = arith.constant 0 : i32
    %c0_i32_0 = arith.constant 0 : i32
    %c0_i32_1 = arith.constant 0 : i32
    return %c0_i32, %c0_i32_0 : i32, i32
  }
}

</mosaic_0001>

<bundles_post_ra>
// kernel: transformer_forward.6
= control target key start
LH: loop header
LB: loop body
LE: loop exit
PB: predicated region body
PF: predicated region fallthrough
CT: control target
= control target key end

     0   :  { %s497_s15 = smov 0   ;;  %s499_s16 = smov 0   ;;  %s539_s0 = inlined_call_operand.vmem [shape: f32[2,8,16], index: 0, kind: input, shape index: {}]   ;;  %s540_s1 = inlined_call_operand.vmem [shape: bf16[16,32], index: 1, kind: input, shape index: {}]   ;;  %s541_s2 = inlined_call_operand.vmem [shape: f32[1,32], index: 2, kind: input, shape index: {}]   ;;  %s542_s3 = inlined_call_operand.vmem [shape: f32[1,2000,32], index: 3, kind: input, shape index: {}]   ;;  %s543_s4 = inlined_call_operand.vmem [shape: bf16[2,8,32], index: 4, kind: output, shape index: {}]  }
   0x1   :  { %s501_s17 = smov 0  }
   0x2 LB: > { %s26_s18 = sadd.s32 1, %s464_s16  ;;  %p403_p0 = scmp.ge.s32.totalorder %s468_s17, 1  ;;  %s468_s17 = sphi %s501_s17, %s14_s17   ;;  %s464_s16 = sphi %s499_s16, %s545_s16   ;;  %s460_s15 = sphi %s497_s15, %s544_s15  }
   0x3   : > { %p28_p1 = scmp.ge.s32.totalorder %s26_s18, 2  ;;  %p189_p2 = scmp.lt.s32.totalorder %s468_s17, 3 }
   0x5   : > { %s547_s18 = smov (%p28_p1, %s26_s18), 0  ;;  %p190_p3 = pnand %p403_p0, %p189_p2 }
   0x6   : > { %p223_p4 = scmp.lt.s32.totalorder (!%p190_p3), %s460_s15, 1 }
   0x7   : > { %193 = sbr.rel (%p190_p3) target bundleno = 218 (0xda), region = 36 }
   0xc   : > { %v445_v0 = vld [vmem:[%s540_s1] sm:$0xff]   ;;  %v470_v1 = vmov 0.0   ;;  %vm471_vm0 = vmmov 0   ;;  %s549_s15 = smov (!%p223_p4, %s460_s15), 1  ;;  %vm259_vm1 = vcmask 130048   ;;  %vm306_vm2 = vcmask 257024  }
   0xd   : > { %413 = vmatprep.subr.bf16.mxu0 %v470_v1  ;;  %415 = vmatprep.mubr.msk.bf16.mxu0 %vm471_vm0, %v470_v1  ;;  %s404_s21 = sshll.u32 %s549_s15, 3  ;;  %v406_v4 = vld [vmem:[%s541_s2] ss:$0 sm:$0xff]  ;;  %s405_s29 = sshll.u32 %s549_s15, 2 }
   0xe   : > { %414 = vmatpush3.bf16.msra.mxu0 %v445_v0  ;;  %s229_s24 = scalar_lea.vmem %s539_s0, %s404_s21  ;;  %v303_v6 = vld [vmem:[%s542_s3] sm:$0xff]  ;;  %s240_s6 = scalar_lea.vmem %s543_s4, %s405_s29 }
   0xf   : > { %v242_v2 = vld [vmem:[%s229_s24] sm:$0xff] }
  0x10   : > { %v243_v3 = vpack.c.bf16 %v242_v2, %v242_v2 }
  0x12   : > { %416 = vmatmul.mubr.msk.bf16.vlgmr.msra.gmra.mxu0 %vm259_vm1, %v243_v3 }
  0xd2   : > { %v297_v5 = vpop.f32.mrf.mxu0 }
  0xd3   : > { %v298_v7 = vadd.f32 %v406_v4, %v297_v5 }
  0xd4   : > { %v417_v8 = vpop.f32.mrf.mxu0 }
  0xd5   : > { %v304_v9 = vadd.f32 %v303_v6, %v298_v7 }
  0xd6   : > { %v300_v10 = vpop.f32.mrf.mxu0 }
  0xd7   : > { %v305_v11 = vpack.c.bf16 %v304_v9, %v304_v9 }
  0xd8   : > { %v418_v12 = vpop.f32.mrf.mxu0 }
  0xd9   : > { %307 = vst.msk [vmem:[%s240_s6] sm:$0xf] %vm306_vm2, %v305_v11 }
  0xda PF: > { %s14_s17 = sadd.s32 1, %s468_s17   ;;  %s544_s15 = smov %s464_s16 }
  0xdb   : > { %p11_p5 = scmp.ge.s32.totalorder %s14_s17, 4   ;;  %s545_s16 = smov %s547_s18 }
  0xdd   :  { %13 = sbr.rel (!%p11_p5) target bundleno = 2 (0x2), region = 69 }

// kernel: transformer_forward.7
= control target key start
LH: loop header
LB: loop body
LE: loop exit
PB: predicated region body
PF: predicated region fallthrough
CT: control target
= control target key end

     0   :  { %s1447_s27 = smov 0   ;;  %s1449_s28 = smov 0   ;;  %s1609_s0 = inlined_call_operand.vmem [shape: bf16[2,8,32], index: 0, kind: input, shape index: {}, may-alias: {0,1}]   ;;  %s1610_s1 = inlined_call_operand.vmem [shape: bf16[2,8,32], index: 1, kind: input, shape index: {}, may-alias: {0,1}]   ;;  %s1611_s2 = inlined_call_operand.vmem [shape: bf16[32,96], index: 2, kind: input, shape index: {}]   ;;  %s1612_s3 = inlined_call_operand.vmem [shape: f32[1,96], index: 3, kind: input, shape index: {}]   ;;  %s1613_s4 = inlined_call_operand.vmem [shape: bf16[32,32], index: 4, kind: input, shape index: {}]   ;;  %s1614_s5 = inlined_call_operand.vmem [shape: f32[1,32], index: 5, kind: input, shape index: {}]   ;;  %s1615_s6 = inlined_call_operand.vmem [shape: f32[1,32], index: 6, kind: input, shape index: {}]   ;;  %s1616_s7 = inlined_call_operand.vmem [shape: f32[1,32], index: 7, kind: input, shape index: {}]   ;;  %s1617_s8 = inlined_call_operand.vmem [shape: bf16[2,8,32], index: 8, kind: output, shape index: {}]  }
   0x1   :  { %s1451_s29 = smov 0  }
   0x2 LB: > { %s30_s30 = sadd.s32 1, %s1386_s28  ;;  %p1178_p0 = scmp.ge.s32.totalorder %s1390_s29, 1  ;;  %s1390_s29 = sphi %s1451_s29, %s18_s29   ;;  %s1386_s28 = sphi %s1449_s28, %s1619_s28   ;;  %s1382_s27 = sphi %s1447_s27, %s1618_s27  }
   0x3   : > { %p32_p1 = scmp.ge.s32.totalorder %s30_s30, 2  ;;  %p289_p2 = scmp.lt.s32.totalorder %s1390_s29, 3 }
   0x5   : > { %s1621_s30 = smov (%p32_p1, %s30_s30), 0  ;;  %p290_p3 = pnand %p1178_p0, %p289_p2 }
   0x6   : > { %s1392_s11 = smov (!%p290_p3), 96   ;;  %p331_p4 = scmp.lt.s32.totalorder (!%p290_p3), %s1382_s27, 1 }
   0x7   : > { %293 = sbr.rel (%p290_p3) target bundleno = 1812 (0x714), region = 52  ;;  %s1395_s23 = smov (!%p290_p3), 120  }
   0x8   : > { %s1396_s24 = smov (!%p290_p3), 112   ;;  %s1397_s25 = smov (!%p290_p3), 104  }
   0x9   : > { %s1398_s26 = smov (!%p290_p3), 64   ;;  %s1400_s13 = smov (!%p290_p3), 16  }
   0xa   : > { %s1401_s14 = smov (!%p290_p3), 24  }
   0xc   : > { %v1468_v0 = vld [vmem:[%s1611_s2 + $0x8] sm:$0xff]   ;;  %v1347_v1 = vld [vmem:[%s1611_s2] sm:$0xff]   ;;  %v1393_v2 = vmov 0.0   ;;  %vm1394_vm0 = vmmov 0   ;;  %s1623_s27 = smov (!%p331_p4, %s1382_s27), 1  ;;  %vm375_vm1 = vcmask 261120  }
   0xd   : > { %422 = vrot.lane.b32.xlu0 %v1468_v0, %s1392_s11  ;;  %1232 = vmatprep.subr.bf16.mxu0 %v1393_v2  ;;  %v1478_v3 = vld [vmem:[%s1612_s3] ss:$0 sm:$0xff]  ;;  %s1488_s16 = sshll.u32 %s1623_s27, 2  ;;  %vm523_vm2 = vcmask 64512   ;;  %vm586_vm3 = vcmask 1043456   ;;  %s1399_s27 = smov 8  }
   0xe   : > { %1240 = vmatprep.subr.bf16.mxu1 %v1393_v2  ;;  %1233 = vmatpush3.bf16.msra.mxu0 %v1468_v0  ;;  %s337_s19 = scalar_lea.vmem %s1609_s0, %s1488_s16  ;;  %s341_s22 = scalar_lea.vmem %s1610_s1, %s1488_s16  ;;  %vm749_vm4 = vcmask 130112   ;;  %vm866_vm5 = vcmask 195712   ;;  %vm983_vm6 = vcmask 261312   ;;  %vm1086_vm7 = vcmask 257024  }
   0xf   : > { %1234 = vmatprep.subr.bf16.mxu0 %v1393_v2  ;;  %1236 = vmatprep.mubr.msk.bf16.mxu0 %vm1394_vm0, %v1393_v2  ;;  %v1494_v4 = vld [vmem:[%s337_s19] sm:$0xf] }
  0x10   : > { %1244 = vmatprep.mubr.msk.bf16.mxu1 %vm1394_vm0, %v1393_v2  ;;  %426 = vrot.lane.b32.xlu1 %v1478_v3, %s1392_s11  ;;  %v351_v7 = vld [vmem:[%s341_s22] sm:$0xf] }
  0x11   : > { %420 = vrot.lane.b32.xlu0 %v1347_v1, %s1392_s11 }
  0x12   : > { %1235 = vmatpush3.bf16.msra.mxu0 %v1347_v1 }
  0x13   : > { %1248 = vmatprep.subr.bf16.mxu0 %v1393_v2 }
  0x15   : > { %1237 = vmatmul.mubr.msk.bf16.vlgmr.msra.gmra.mxu0 %vm375_vm1, %v1494_v4 }
  0x16   : > { %1252 = vmatprep.mubr.msk.bf16.mxu0 %vm1394_vm0, %v1393_v2 }
  0x7f   : > { %v423_v5 = vpop.permute.xlu0 %422 }
  0x80   : > { %1241 = vmatpush3.bf16.msra.mxu1 %v423_v5 }
  0x81   : > { %1242 = vmatprep.subr.bf16.mxu1 %v1393_v2 }
  0x82   : > { %v427_v14 = vpop.permute.xlu1 %426 }
  0x83   : > { %v421_v6 = vpop.permute.xlu0 %420 }
  0x84   : > { %1243 = vmatpush3.bf16.msra.mxu1 %v421_v6 }
  0x85   : > { %1256 = vmatprep.subr.bf16.mxu1 %v1393_v2 }
  0x87   : > { %1245 = vmatmul.mubr.msk.bf16.vlgmr.msra.gmra.mxu1 %vm375_vm1, %v351_v7 }
  0x88   : > { %1258 = vmatprep.mubr.msk.bf16.mxu1 %vm1394_vm0, %v1393_v2 }
  0xd5   : > { %v413_v8 = vpop.f32.mrf.mxu0 }
  0xd6   : > { %v414_v9 = vadd.f32 %v1478_v3, %v413_v8 }
  0xd7   : > { %v1238_v10 = vpop.f32.mrf.mxu0 }
  0xd8   : > { %v419_v11 = vpack.c.bf16 %v414_v9, %v414_v9 }
  0xd9   : > { %v416_v12 = vpop.f32.mrf.mxu0 }
  0xda   : > { %632 = vrot.lane.b32.xlu0 %v419_v11, %s1395_s23 }
  0xdb   : > { %v1239_v13 = vpop.f32.mrf.mxu0 }
  0xde   : > { %751 = vrot.lane.b32.xlu0 %v419_v11, %s1396_s24 }
  0xe2   : > { %868 = vrot.lane.b32.xlu0 %v419_v11, %s1397_s25 }
  0xe6   : > { %473 = vrot.lane.b32.xlu0 %v1347_v1, %s1398_s26 }
 0x147   : > { %v466_v15 = vpop.f32.mrf.mxu1 }
 0x148   : > { %v467_v16 = vadd.f32 %v466_v15, %v427_v14 }
 0x149   : > { %v1246_v17 = vpop.f32.mrf.mxu1 }
 0x14a   : > { %v472_v18 = vpack.c.bf16 %v467_v16, %v467_v16 }
 0x14b   : > { %v469_v19 = vpop.f32.mrf.mxu1 }
 0x14c   : > { %635 = vrot.lane.b32.xlu1 %v472_v18, %s1395_s23  ;;  %v528_v20 = vsel %vm523_vm2, %v472_v18, 0  ;;  %v633_v22 = vpop.permute.xlu0 %632 }
 0x14d   : > { %v1247_v21 = vpop.f32.mrf.mxu1  ;;  %1257 = vmatpush3.bf16.xpose.msra.mxu1 %v528_v20 }
 0x14e   : > { %1268 = vmatprep.subr.bf16.mxu1 %v1393_v2 }
 0x150   : > { %753 = vrot.lane.b32.xlu1 %v472_v18, %s1396_s24  ;;  %v752_v26 = vpop.permute.xlu0 %751 }
 0x154   : > { %870 = vrot.lane.b32.xlu1 %v472_v18, %s1397_s25  ;;  %1259 = vmatmul.mubr.msk.bf16.vlgmr.msra.gmra.mxu1 %vm523_vm2, %v419_v11  ;;  %v869_v29 = vpop.permute.xlu0 %868 }
 0x155   : > { %1270 = vmatprep.mubr.msk.bf16.mxu1 %vm1394_vm0, %v1393_v2 }
 0x158   : > { %475 = vrot.lane.b32.xlu1 %v1468_v0, %s1398_s26  ;;  %v474_v31 = vpop.permute.xlu0 %473 }
 0x1be   : > { %v636_v23 = vpop.permute.xlu1 %635 }
 0x1bf   : > { %v641_v24 = vsel %vm523_vm2, %v636_v23, 0 }
 0x1c0   : > { %1269 = vmatpush3.bf16.xpose.msra.mxu1 %v641_v24 }
 0x1c1   : > { %1280 = vmatprep.subr.bf16.mxu1 %v1393_v2 }
 0x1c2   : > { %v754_v25 = vpop.permute.xlu1 %753 }
 0x1c3   : > { %v759_v28 = vsel %vm523_vm2, %v754_v25, 0 }
 0x1c6   : > { %v871_v27 = vpop.permute.xlu1 %870 }
 0x1c7   : > { %1271 = vmatmul.mubr.msk.bf16.vlgmr.msra.gmra.mxu1 %vm523_vm2, %v633_v22  ;;  %v876_v32 = vsel %vm523_vm2, %v871_v27, 0 }
 0x1c8   : > { %1281 = vmatpush3.bf16.xpose.msra.mxu1 %v759_v28  ;;  %1282 = vmatprep.mubr.msk.bf16.mxu1 %vm1394_vm0, %v1393_v2 }
 0x1c9   : > { %1292 = vmatprep.subr.bf16.mxu1 %v1393_v2 }
 0x1ca   : > { %v476_v30 = vpop.permute.xlu1 %475 }
 0x1cb   : > { %1249 = vmatpush3.bf16.msra.mxu0 %v476_v30 }
 0x1cc   : > { %1250 = vmatprep.subr.bf16.mxu0 %v1393_v2 }
 0x1cf   : > { %1283 = vmatmul.mubr.msk.bf16.vlgmr.msra.gmra.mxu1 %vm523_vm2, %v752_v26  ;;  %1251 = vmatpush3.bf16.msra.mxu0 %v474_v31 }
 0x1d0   : > { %1293 = vmatpush3.bf16.xpose.msra.mxu1 %v876_v32  ;;  %1294 = vmatprep.mubr.msk.bf16.mxu1 %vm1394_vm0, %v1393_v2 }
 0x1d1   : > { %1262 = vmatprep.subr.bf16.mxu0 %v1393_v2  ;;  %1304 = vmatprep.subr.bf16.mxu1 %v1393_v2 }
 0x1d2   : > { %1253 = vmatmul.mubr.msk.bf16.vlgmr.msra.gmra.mxu0 %vm375_vm1, %v351_v7 }
 0x1d3   : > { %1264 = vmatprep.mubr.msk.bf16.mxu0 %vm1394_vm0, %v1393_v2 }
 0x1d7   : > { %1295 = vmatmul.mubr.msk.bf16.vlgmr.msra.gmra.mxu1 %vm523_vm2, %v869_v29 }
 0x1d8   : > { %1308 = vmatprep.mubr.msk.bf16.mxu1 %vm1394_vm0, %v1393_v2 }
 0x214   : > { %v564_v33 = vpop.f32.mrf.mxu1 }
 0x215   : > { %v570_v34 = vmul.f32 0.35355338, %v564_v33 }
 0x216   : > { %v1260_v35 = vpop.f32.mrf.mxu1 }
 0x217   : > { %v571_v36 = vsel %vm523_vm2, %v570_v34, -inf }
 0x218   : > { %572 = vmax.xlane.f32.xlu1 %v571_v36  ;;  %v567_v37 = vpop.f32.mrf.mxu1 }
 0x21a   : > { %v1261_v38 = vpop.f32.mrf.mxu1 }
 0x287   : > { %v677_v39 = vpop.f32.mrf.mxu1 }
 0x288   : > { %v683_v40 = vmul.f32 0.35355338, %v677_v39 }
 0x289   : > { %v1272_v41 = vpop.f32.mrf.mxu1 }
 0x28a   : > { %v684_v42 = vsel %vm523_vm2, %v683_v40, -inf }
 0x28b   : > { %685 = vmax.xlane.f32.xlu0 %v684_v42  ;;  %v680_v43 = vpop.f32.mrf.mxu1 }
 0x28d   : > { %v1273_v44 = vpop.f32.mrf.mxu1 }
 0x28f   : > { %v795_v45 = vpop.f32.mrf.mxu1 }
 0x290   : > { %v801_v46 = vmul.f32 0.35355338, %v795_v45 }
 0x291   : > { %v1284_v47 = vpop.f32.mrf.mxu1 }
 0x292   : > { %v802_v48 = vsel %vm523_vm2, %v801_v46, -inf  ;;  %v516_v62 = vpop.f32.mrf.mxu0 }
 0x293   : > { %803 = vmax.xlane.f32.xlu0 %v802_v48  ;;  %v798_v49 = vpop.f32.mrf.mxu1 }
 0x294   : > { %v1254_v63 = vpop.f32.mrf.mxu0 }
 0x295   : > { %v1285_v50 = vpop.f32.mrf.mxu1 }
 0x296   : > { %v519_v0 = vpop.f32.mrf.mxu0 }
 0x297   : > { %v912_v51 = vpop.f32.mrf.mxu1 }
 0x298   : > { %v918_v52 = vmul.f32 0.35355338, %v912_v51  ;;  %v1255_v1 = vpop.f32.mrf.mxu0 }
 0x299   : > { %v1296_v53 = vpop.f32.mrf.mxu1 }
 0x29a   : > { %v919_v54 = vsel %vm523_vm2, %v918_v52, -inf }
 0x29b   : > { %920 = vmax.xlane.f32.xlu1 %v919_v54  ;;  %v915_v55 = vpop.f32.mrf.mxu1  ;;  %v1349_v54 = vld [vmem:[%s1613_s4] sm:$0xff]  }
 0x29d   : > { %v1297_v56 = vpop.f32.mrf.mxu1 }
 0x2a1   : > { %v573_v57 = vpop.xlane.xlu1 %572 }
 0x2a2   : > { %v574_v58 = vsub.f32 %v570_v34, %v573_v57 }
 0x2a4   : > { %v575_v59 = vmul.f32 1.442695, %v574_v58 }
 0x2a6   : > { %1350 = vpow2.f32 %v575_v59 }
 0x2a9   : > { %479 = vrot.lane.b32.xlu0 %v1478_v3, %s1398_s26 }
 0x2b3   : > { %v1351_v60 = vpop.eup %1350 }
 0x2b4   : > { %v577_v61 = vsel %vm523_vm2, %v1351_v60, 0.0 }
 0x2b5   : > { %578 = vadd.xlane.f32.xlu1 %v577_v61 }
 0x314   : > { %v686_v5 = vpop.xlane.xlu0 %685 }
 0x315   : > { %v687_v6 = vsub.f32 %v683_v40, %v686_v5 }
 0x317   : > { %v688_v7 = vmul.f32 1.442695, %v687_v6  ;;  %v1196_v6 = vld [vmem:[%s1614_s5] ss:$0 sm:$0xff] }
 0x319   : > { %1352 = vpow2.f32 %v688_v7  ;;  %v1053_v7 = vunpack.c.l.bf16 %v1494_v4 }
 0x31c   : > { %v804_v8 = vpop.xlane.xlu0 %803 }
 0x31d   : > { %v805_v9 = vsub.f32 %v801_v46, %v804_v8 }
 0x31f   : > { %v806_v10 = vmul.f32 1.442695, %v805_v9 }
 0x320   : > { %v480_v11 = vpop.permute.xlu0 %479 }
 0x321   : > { %1354 = vpow2.f32 %v806_v10  ;;  %v517_v12 = vadd.f32 %v516_v62, %v480_v11 }
 0x323   : > { %v522_v3 = vpack.c.bf16 %v517_v12, %v517_v12 }
 0x324   : > { %v921_v13 = vpop.xlane.xlu1 %920 }
 0x325   : > { %v922_v14 = vsub.f32 %v918_v52, %v921_v13  ;;  %v588_v15 = vsel %vm586_vm3, %v522_v3, 0  ;;  %814 = vrot.lane.b32.xlu0 %v522_v3, %s1396_s24  ;;  %v1348_v52 = vld [vmem:[%s1613_s4 + $0x8] sm:$0xff]   ;;  %s348_s24 = scalar_lea.vmem %s1617_s8, %s1488_s16 }
 0x326   : > { %v1353_v16 = vpop.eup %1352  ;;  %1263 = vmatpush3.bf16.msra.mxu0 %v588_v15  ;;  %1305 = vmatpush3.bf16.msra.mxu1 %v1348_v52 }
 0x327   : > { %v923_v17 = vmul.f32 1.442695, %v922_v14  ;;  %v690_v18 = vsel %vm523_vm2, %v1353_v16, 0.0  ;;  %1274 = vmatprep.subr.bf16.mxu0 %v1393_v2  ;;  %1306 = vmatprep.subr.bf16.mxu1 %v1393_v2 }
 0x328   : > { %691 = vadd.xlane.f32.xlu1 %v690_v18 }
 0x329   : > { %1356 = vpow2.f32 %v923_v17  ;;  %931 = vrot.lane.b32.xlu0 %v522_v3, %s1397_s25 }
 0x32a   : > { %1307 = vmatpush3.bf16.msra.mxu1 %v1349_v54 }
 0x32e   : > { %v1355_v19 = vpop.eup %1354 }
 0x32f   : > { %v808_v20 = vsel %vm523_vm2, %v1355_v19, 0.0 }
 0x330   : > { %809 = vadd.xlane.f32.xlu1 %v808_v20 }
 0x336   : > { %v1357_v21 = vpop.eup %1356 }
 0x337   : > { %v925_v22 = vsel %vm523_vm2, %v1357_v21, 0.0 }
 0x338   : > { %926 = vadd.xlane.f32.xlu1 %v925_v22  ;;  %v1200_v22 = vld [vmem:[%s1615_s6] ss:$0 sm:$0xff] }
 0x33e   : > { %v579_v23 = vpop.xlane.xlu1 %578 }
 0x33f   : > { %1358 = vrcp.f32 %v579_v23 }
 0x349   : > { %697 = vrot.lane.b32.xlu1 %v522_v3, %s1395_s23 }
 0x34c   : > { %v1359_v24 = vpop.eup %1358 }
 0x34d   : > { %v581_v25 = vmul.f32 %v1359_v24, %v1351_v60  ;;  %v1201_v24 = vld [vmem:[%s1616_s7] ss:$0 sm:$0xff] }
 0x34f   : > { %v582_v26 = vpack.c.bf16 %v581_v25, %v581_v25 }
 0x351   : > { %1265 = vmatmul.mubr.msk.bf16.vlgmr.msra.gmra.mxu0 %vm523_vm2, %v582_v26 }
 0x352   : > { %1276 = vmatprep.mubr.msk.bf16.mxu0 %vm1394_vm0, %v1393_v2 }
 0x397   : > { %v815_v36 = vpop.permute.xlu0 %814 }
 0x398   : > { %v820_v37 = vsel %vm586_vm3, %v815_v36, 0 }
 0x39b   : > { %v932_v39 = vpop.permute.xlu0 %931 }
 0x39c   : > { %v937_v42 = vsel %vm586_vm3, %v932_v39, 0 }
 0x3b1   : > { %v692_v27 = vpop.xlane.xlu1 %691 }
 0x3b2   : > { %1360 = vrcp.f32 %v692_v27 }
 0x3b9   : > { %v810_v28 = vpop.xlane.xlu1 %809 }
 0x3ba   : > { %1362 = vrcp.f32 %v810_v28 }
 0x3bf   : > { %v1361_v29 = vpop.eup %1360 }
 0x3c0   : > { %v694_v31 = vmul.f32 %v1361_v29, %v1353_v16 }
 0x3c1   : > { %v927_v30 = vpop.xlane.xlu1 %926 }
 0x3c2   : > { %1364 = vrcp.f32 %v927_v30  ;;  %v695_v34 = vpack.c.bf16 %v694_v31, %v694_v31 }
 0x3c5   : > { %v698_v32 = vpop.permute.xlu1 %697 }
 0x3c6   : > { %v703_v33 = vsel %vm586_vm3, %v698_v32, 0 }
 0x3c7   : > { %1275 = vmatpush3.bf16.msra.mxu0 %v703_v33  ;;  %v1363_v35 = vpop.eup %1362 }
 0x3c8   : > { %1286 = vmatprep.subr.bf16.mxu0 %v1393_v2  ;;  %v812_v38 = vmul.f32 %v1363_v35, %v1355_v19 }
 0x3ca   : > { %1277 = vmatmul.mubr.msk.bf16.vlgmr.msra.gmra.mxu0 %vm523_vm2, %v695_v34  ;;  %v813_v40 = vpack.c.bf16 %v812_v38, %v812_v38 }
 0x3cb   : > { %1287 = vmatpush3.bf16.msra.mxu0 %v820_v37  ;;  %1288 = vmatprep.mubr.msk.bf16.mxu0 %vm1394_vm0, %v1393_v2 }
 0x3cc   : > { %1298 = vmatprep.subr.bf16.mxu0 %v1393_v2 }
 0x3cf   : > { %v1365_v41 = vpop.eup %1364 }
 0x3d0   : > { %v929_v43 = vmul.f32 %v1365_v41, %v1357_v21 }
 0x3d2   : > { %1289 = vmatmul.mubr.msk.bf16.vlgmr.msra.gmra.mxu0 %vm523_vm2, %v813_v40  ;;  %v930_v44 = vpack.c.bf16 %v929_v43, %v929_v43 }
 0x3d3   : > { %1299 = vmatpush3.bf16.msra.mxu0 %v937_v42  ;;  %1300 = vmatprep.mubr.msk.bf16.mxu0 %vm1394_vm0, %v1393_v2 }
 0x3da   : > { %1301 = vmatmul.mubr.msk.bf16.vlgmr.msra.gmra.mxu0 %vm523_vm2, %v930_v44 }
 0x411   : > { %v624_v45 = vpop.f32.mrf.mxu0 }
 0x412   : > { %630 = vst.msk [vmem:[#allocation2] sm:$0xff] %vm523_vm2, %v624_v45 }
 0x413   : > { %v1266_v46 = vpop.f32.mrf.mxu0 }
 0x415   : > { %v627_v47 = vpop.f32.mrf.mxu0 }
 0x417   : > { %v1267_v48 = vpop.f32.mrf.mxu0 }
 0x48a   : > { %v739_v49 = vpop.f32.mrf.mxu0 }
 0x48b   : > { %746 = vrot.lane.b32.xlu0 %v739_v49, %s1399_s27 }
 0x48c   : > { %v1278_v50 = vpop.f32.mrf.mxu0 }
 0x48e   : > { %v742_v51 = vpop.f32.mrf.mxu0 }
 0x490   : > { %v1279_v53 = vpop.f32.mrf.mxu0 }
 0x492   : > { %v856_v55 = vpop.f32.mrf.mxu0 }
 0x493   : > { %863 = vrot.lane.b32.xlu0 %v856_v55, %s1400_s13 }
 0x494   : > { %v1290_v56 = vpop.f32.mrf.mxu0 }
 0x496   : > { %v859_v57 = vpop.f32.mrf.mxu0 }
 0x498   : > { %v1291_v58 = vpop.f32.mrf.mxu0 }
 0x49a   : > { %v973_v59 = vpop.f32.mrf.mxu0 }
 0x49b   : > { %980 = vrot.lane.b32.xlu1 %v973_v59, %s1401_s14 }
 0x49c   : > { %v1302_v60 = vpop.f32.mrf.mxu0 }
 0x49e   : > { %v976_v61 = vpop.f32.mrf.mxu0 }
 0x4a0   : > { %v1303_v62 = vpop.f32.mrf.mxu0 }
 0x4fd   : > { %v747_v63 = vpop.permute.xlu0 %746 }
 0x4fe   : > { %750 = vst.msk [vmem:[#allocation2] sm:$0xff] %vm749_vm4, %v747_v63 }
 0x505   : > { %v864_v0 = vpop.permute.xlu0 %863 }
 0x506   : > { %867 = vst.msk [vmem:[#allocation2] sm:$0xff] %vm866_vm5, %v864_v0 }
 0x50d   : > { %v981_v2 = vpop.permute.xlu1 %980 }
 0x50e   : > { %984 = vst.msk [vmem:[#allocation2] sm:$0xff] %vm983_vm6, %v981_v2 }
 0x515   : > { %v985_v1 = vld [vmem:[#allocation2] sm:$0xff] }
 0x516   : > { %v986_v5 = vpack.c.bf16 %v985_v1, %v985_v1 }
 0x518   : > { %1309 = vmatmul.mubr.msk.bf16.vlgmr.msra.gmra.mxu1 %vm375_vm1, %v986_v5 }
 0x5d8   : > { %v1047_v8 = vpop.f32.mrf.mxu1 }
 0x5d9   : > { %v1048_v9 = vadd.f32 %v1196_v6, %v1047_v8 }
 0x5da   : > { %v1310_v10 = vpop.f32.mrf.mxu1 }
 0x5db   : > { %v1054_v11 = vadd.f32 %v1053_v7, %v1048_v9 }
 0x5dc   : > { %v1050_v12 = vpop.f32.mrf.mxu1 }
 0x5dd   : > { %v1055_v3 = vsel %vm375_vm1, %v1054_v11, 0.0 }
 0x5de   : > { %1056 = vadd.xlane.f32.xlu0 %v1055_v3  ;;  %v1311_v13 = vpop.f32.mrf.mxu1 }
 0x667   : > { %v1057_v14 = vpop.xlane.xlu0 %1056 }
 0x668   : > { %v1059_v15 = vmul.f32 0.03125, %v1057_v14 }
 0x66a   : > { %v1060_v16 = vsub.f32 %v1054_v11, %v1059_v15 }
 0x66c   : > { %v1061_v17 = vmul.f32 %v1060_v16, %v1060_v16 }
 0x66e   : > { %v1062_v18 = vsel %vm375_vm1, %v1061_v17, 0.0 }
 0x66f   : > { %1063 = vadd.xlane.f32.xlu1 %v1062_v18 }
 0x6f8   : > { %v1064_v19 = vpop.xlane.xlu1 %1063 }
 0x6f9   : > { %v1065_v20 = vmul.f32 0.03125, %v1064_v19 }
 0x6fb   : > { %v1066_v4 = vadd.f32 1e-05, %v1065_v20 }
 0x6fd   : > { %1366 = vrsqrt.f32 %v1066_v4 }
 0x70a   : > { %v1367_v21 = vpop.eup %1366 }
 0x70b   : > { %v1068_v23 = vmul.f32 %v1367_v21, %v1060_v16 }
 0x70d   : > { %v1076_v25 = vmul.f32 %v1200_v22, %v1068_v23 }
 0x70f   : > { %v1084_v26 = vadd.f32 %v1201_v24, %v1076_v25 }
 0x711   : > { %v1085_v27 = vpack.c.bf16 %v1084_v26, %v1084_v26 }
 0x713   : > { %1087 = vst.msk [vmem:[%s348_s24] sm:$0xf] %vm1086_vm7, %v1085_v27 }
 0x714 PF: > { %s18_s29 = sadd.s32 1, %s1390_s29   ;;  %s1618_s27 = smov %s1386_s28 }
 0x715   : > { %p15_p5 = scmp.ge.s32.totalorder %s18_s29, 4   ;;  %s1619_s28 = smov %s1621_s30 }
 0x717   :  { %17 = sbr.rel (!%p15_p5) target bundleno = 2 (0x2), region = 85 }

// kernel: transformer_forward.11
= control target key start
LH: loop header
LB: loop body
LE: loop exit
PB: predicated region body
PF: predicated region fallthrough
CT: control target
= control target key end

     0   :  { %vm20_vm0 = vcmask 254976   ;;  %v184_v0 = vmov 0.0   ;;  %vm185_vm1 = vmmov 0   ;;  %vm27_vm2 = vcmask 261120   ;;  %s227_s0 = inlined_call_operand.vmem [shape: bf16[2,8,32], index: 0, kind: input, shape index: {}]   ;;  %s228_s1 = inlined_call_operand.vmem [shape: bf16[32,5], index: 1, kind: input, shape index: {}]   ;;  %s229_s2 = inlined_call_operand.vmem [shape: f32[1,5], index: 2, kind: input, shape index: {}]   ;;  %s230_s3 = inlined_call_operand.hbm [shape: f32[2,5], index: 3, kind: output, shape index: {}]  }
   0x1   :  { %21 = vst.msk [vmem:[#allocation2] sm:$0x3] %vm20_vm0, %v184_v0  ;;  %149 = vmatprep.subr.bf16.mxu0 %v184_v0  ;;  %v160_v1 = vld [vmem:[%s228_s1 + $0x8] sm:$0xff]   ;;  %153 = vmatprep.mubr.msk.bf16.mxu0 %vm185_vm1, %v184_v0  ;;  %v143_v2 = vld [vmem:[%s227_s0] sm:$0xff]  }
   0x2   :  { %150 = vmatpush3.bf16.msra.mxu0 %v160_v1  ;;  %v161_v3 = vld [vmem:[%s228_s1] sm:$0xff]   ;;  %v144_v4 = vunpack.c.l.bf16 %v143_v2  ;;  %v145_v5 = vunpack.c.h.bf16 %v143_v2 }
   0x3   :  { %8 = vsyncpa [#allocation4], 0  ;;  %151 = vmatprep.subr.bf16.mxu0 %v184_v0  ;;  %vm44_vm3 = vcmask 1041409   ;;  %v138_v26 = vld [vmem:[%s229_s2] ss:$0 sm:$0xff]  ;;  %s186_s18 = smov [#allocation3]  }
   0x4   :  { %v28_v6 = vsel %vm27_vm2, %v144_v4, 0.0  ;;  %v35_v7 = vsel %vm27_vm2, %v145_v5, 0.0  ;;  %s130_s19 = sshll.u32 %s186_s18, 4  ;;  %vm122_vm4 = vcmask 33792   ;;  %s131_s19 = int_to_ptr.vmem [resolvable:$true] %s130_s19 }
   0x5   :  { %v29_v8 = vrot.slane %v28_v6, 4  ;;  %v36_v9 = vrot.slane %v35_v7, 4  ;;  %s162_s20 = scalar_lea.vmem %s131_s19, 32  ;;  %p167_p1 = scmp.lt.s32.totalorder %s131_s19, %s131_s19 }
   0x6   :  { %152 = vmatpush3.bf16.msra.mxu0 %v161_v3  ;;  %p163_p0 = scmp.ne.s32.totalorder %s131_s19, %s162_s20  ;;  %p168_p2 = scmp.lt.s32.totalorder %s162_s20, %s162_s20 }
   0x7   :  { %v30_v10 = vadd.f32 %v29_v8, %v28_v6  ;;  %v37_v11 = vadd.f32 %v36_v9, %v35_v7 }
   0x8   :  { %v22_v18 = vld [vmem:[#allocation2] sm:$0x3]  ;;  %p169_p3 = por %p168_p2, %p167_p1 }
   0x9   :  { %v31_v12 = vrot.slane %v30_v10, 2  ;;  %v38_v13 = vrot.slane %v37_v11, 2 }
   0xa   :  { %p170_p4 = pnand %p169_p3, %p163_p0 }
   0xb   :  { %v32_v14 = vadd.f32 %v31_v12, %v30_v10  ;;  %v39_v15 = vadd.f32 %v38_v13, %v37_v11 }
   0xd   :  { %v33_v16 = vrot.slane %v32_v14, 1  ;;  %v40_v17 = vrot.slane %v39_v15, 1 }
   0xf   :  { %v34_v19 = vadd.f32 %v33_v16, %v32_v14  ;;  %v41_v20 = vadd.f32 %v40_v17, %v39_v15 }
  0x11   :  { %v45_v21 = vsel %vm44_vm3, %v41_v20, %v34_v19 }
  0x12   :  { %v47_v22 = vadd.f32 %v45_v21, %v22_v18 }
  0x14   :  { %49 = vst.msk [vmem:[#allocation2] sm:$0x3] %vm20_vm0, %v47_v22 }
  0x1b   :  { %v53_v23 = vld [vmem:[#allocation2] sm:$0x3] }
  0x1c   :  { %v54_v24 = vmul.f32 0.125, %v53_v23 }
  0x1e   :  { %v55_v25 = vpack.c.bf16 %v54_v24, %v54_v24 }
  0x20   :  { %154 = vmatmul.mubr.msk.bf16.vlgmr.msra.gmra.mxu0 %vm27_vm2, %v55_v25 }
  0xe0   :  { %v116_v27 = vpop.f32.mrf.mxu0 }
  0xe1   :  { %v117_v28 = vadd.f32 %v138_v26, %v116_v27 }
  0xe2   :  { %v155_v29 = vpop.f32.mrf.mxu0 }
  0xe3   :  { %123 = vst.msk [vmem:[#allocation3] sm:$0x3] %vm122_vm4, %v117_v28 }
  0xe4   :  { %v119_v30 = vpop.f32.mrf.mxu0 }
  0xe5   :  { %173 = shalt.err (!%p170_p4)
}
  0xe6   :  { %133 = dma.vmem_to_hbm [thread:$0]  %s131_s19, 32, %s230_s3, [#allocation4]   ;;  %v156_v31 = vpop.f32.mrf.mxu0 }
  0xe7   :  { %182 = dma.done.wait [#allocation4], 32  }
  0xe8   :  { %183 = vsyncadd [#allocation4], 4294967264 }
  0xe9   :  { %137 = vsyncpa [#allocation4], 1 }

// kernel: transformer_forward.8
= control target key start
LH: loop header
LB: loop body
LE: loop exit
PB: predicated region body
PF: predicated region fallthrough
CT: control target
= control target key end

     0   :  { %v2617_v3 = vmov 0   ;;  %vm310_vm0 = vcmask 261120   ;;  %vm2122_vm1 = vcmask 257024   ;;  %s3293_s1 = inlined_call_operand.vmem [shape: bf16[32,2048], index: 1, kind: input, shape index: {}]   ;;  %s3294_s0 = inlined_call_operand.vmem [shape: bf16[16,32], index: 0, kind: input, shape index: {}]   ;;  %s3295_s3 = inlined_call_operand.vmem [shape: bf16[2048,32], index: 3, kind: input, shape index: {}]   ;;  %s3296_s2 = inlined_call_operand.vmem [shape: f32[1,2048], index: 2, kind: input, shape index: {}]   ;;  %s3297_s4 = inlined_call_operand.vmem [shape: f32[1,32], index: 4, kind: input, shape index: {}]   ;;  %s3298_s5 = inlined_call_operand.vmem [shape: f32[1,32], index: 5, kind: input, shape index: {}]   ;;  %s3299_s6 = inlined_call_operand.vmem [shape: f32[1,32], index: 6, kind: input, shape index: {}]   ;;  %s3300_s7 = inlined_call_operand.vmem [shape: bf16[16,32], index: 7, kind: output, shape index: {}]  }
   0x1   :  { %v45_v0 = vld [vmem:[%s3293_s1 + $0x80] sm:$0xff]  ;;  %v46_v2 = vld [vmem:[%s3293_s1 + $0x88] sm:$0xff]  ;;  %346 = vmatprep.mubr.bf16.mxu0 %v2617_v3  ;;  %389 = vmatprep.mubr.bf16.mxu1 %v2617_v3  ;;  %v47_v15 = vld [vmem:[%s3293_s1 + $0x90] sm:$0xff] }
   0x2   :  { %v53_v1 = vld [vmem:[%s3293_s1 + $0xc0] sm:$0xff]  ;;  %v54_v5 = vld [vmem:[%s3293_s1 + $0xc8] sm:$0xff]  ;;  %v55_v16 = vld [vmem:[%s3293_s1 + $0xd0] sm:$0xff] }
   0x3   :  { %v2147_v4 = vcombine.high %v45_v0, %v53_v1  ;;  %v2146_v6 = vcombine.low %v45_v0, %v53_v1  ;;  %v29_v7 = vld [vmem:[%s3293_s1] sm:$0xff]  ;;  %v2149_v9 = vcombine.high %v46_v2, %v54_v5  ;;  %v2148_v10 = vcombine.low %v46_v2, %v54_v5  ;;  %v30_v12 = vld [vmem:[%s3293_s1 + $0x8] sm:$0xff]  ;;  %v48_v17 = vld [vmem:[%s3293_s1 + $0x98] sm:$0xff] }
   0x4   :  { %v37_v8 = vld [vmem:[%s3293_s1 + $0x40] sm:$0xff]  ;;  %v38_v13 = vld [vmem:[%s3293_s1 + $0x48] sm:$0xff]  ;;  %v56_v20 = vld [vmem:[%s3293_s1 + $0xd8] sm:$0xff]  ;;  %v2151_v22 = vcombine.high %v47_v15, %v55_v16  ;;  %v2150_v28 = vcombine.low %v47_v15, %v55_v16 }
   0x5   :  { %v2131_v11 = vcombine.high %v29_v7, %v37_v8  ;;  %326 = vmatprep.subr.bf16.mxu0 %v2147_v4  ;;  %v2133_v14 = vcombine.high %v30_v12, %v38_v13  ;;  %369 = vmatprep.subr.bf16.mxu1 %v2149_v9  ;;  %v2130_v18 = vcombine.low %v29_v7, %v37_v8  ;;  %v2696_v19 = vld [vmem:[%s3294_s0] sm:$0xff]   ;;  %v31_v24 = vld [vmem:[%s3293_s1 + $0x10] sm:$0xff]  ;;  %v32_v26 = vld [vmem:[%s3293_s1 + $0x18] sm:$0xff] }
   0x6   :  { %327 = vmatpush1.bf16.msra.mxu0 %v2146_v6  ;;  %370 = vmatpush1.bf16.msra.mxu1 %v2148_v10  ;;  %v2132_v21 = vcombine.low %v30_v12, %v38_v13  ;;  %v2153_v23 = vcombine.high %v48_v17, %v56_v20  ;;  %v39_v25 = vld [vmem:[%s3293_s1 + $0x50] sm:$0xff]  ;;  %v40_v27 = vld [vmem:[%s3293_s1 + $0x58] sm:$0xff]  ;;  %v2152_v29 = vcombine.low %v48_v17, %v56_v20  ;;  %v49_v32 = vld [vmem:[%s3293_s1 + $0xa0] sm:$0xff] }
   0x7   :  { %328 = vmatprep.subr.bf16.mxu0 %v2131_v11  ;;  %371 = vmatprep.subr.bf16.mxu1 %v2133_v14  ;;  %v2135_v30 = vcombine.high %v31_v24, %v39_v25  ;;  %v2137_v31 = vcombine.high %v32_v26, %v40_v27  ;;  %v57_v33 = vld [vmem:[%s3293_s1 + $0xe0] sm:$0xff]  ;;  %v50_v34 = vld [vmem:[%s3293_s1 + $0xa8] sm:$0xff]  ;;  %v2134_v36 = vcombine.low %v31_v24, %v39_v25  ;;  %v51_v45 = vld [vmem:[%s3293_s1 + $0xb0] sm:$0xff] }
   0x8   :  { %v58_v35 = vld [vmem:[%s3293_s1 + $0xe8] sm:$0xff]  ;;  %v33_v37 = vld [vmem:[%s3293_s1 + $0x20] sm:$0xff]  ;;  %v2136_v38 = vcombine.low %v32_v26, %v40_v27  ;;  %v2155_v39 = vcombine.high %v49_v32, %v57_v33  ;;  %v2154_v44 = vcombine.low %v49_v32, %v57_v33  ;;  %v59_v48 = vld [vmem:[%s3293_s1 + $0xf0] sm:$0xff] }
   0x9   :  { %v41_v40 = vld [vmem:[%s3293_s1 + $0x60] sm:$0xff]  ;;  %v2157_v41 = vcombine.high %v50_v34, %v58_v35  ;;  %v34_v42 = vld [vmem:[%s3293_s1 + $0x28] sm:$0xff]  ;;  %v2156_v46 = vcombine.low %v50_v34, %v58_v35  ;;  %v52_v50 = vld [vmem:[%s3293_s1 + $0xb8] sm:$0xff]  ;;  %v2159_v55 = vcombine.high %v51_v45, %v59_v48  ;;  %v2158_v60 = vcombine.low %v51_v45, %v59_v48 }
   0xa   :  { %329 = vmatpush1.bf16.msra.mxu0 %v2130_v18  ;;  %372 = vmatpush1.bf16.msra.mxu1 %v2132_v21  ;;  %v42_v43 = vld [vmem:[%s3293_s1 + $0x68] sm:$0xff]  ;;  %v2139_v47 = vcombine.high %v33_v37, %v41_v40  ;;  %v60_v51 = vld [vmem:[%s3293_s1 + $0xf8] sm:$0xff]  ;;  %v2138_v52 = vcombine.low %v33_v37, %v41_v40  ;;  %v35_v53 = vld [vmem:[%s3293_s1 + $0x30] sm:$0xff] }
   0xb   :  { %412 = vmatprep.subr.bf16.mxu0 %v2151_v22  ;;  %455 = vmatprep.subr.bf16.mxu1 %v2153_v23  ;;  %v2141_v49 = vcombine.high %v34_v42, %v42_v43  ;;  %v2140_v54 = vcombine.low %v34_v42, %v42_v43  ;;  %v43_v56 = vld [vmem:[%s3293_s1 + $0x70] sm:$0xff]  ;;  %v2161_v57 = vcombine.high %v52_v50, %v60_v51  ;;  %v36_v58 = vld [vmem:[%s3293_s1 + $0x38] sm:$0xff]  ;;  %v2491_v10 = vld [vmem:[%s3295_s3 + $0x68] sm:$0xff]  }
   0xc   :  { %v44_v59 = vld [vmem:[%s3293_s1 + $0x78] sm:$0xff]  ;;  %v2160_v61 = vcombine.low %v52_v50, %v60_v51  ;;  %v2143_v62 = vcombine.high %v35_v53, %v43_v56  ;;  %v2142_v0 = vcombine.low %v35_v53, %v43_v56  ;;  %v2487_v7 = vld [vmem:[%s3295_s3 + $0x70] sm:$0xff]   ;;  %v2492_v11 = vld [vmem:[%s3295_s3 + $0xe8] sm:$0xff]  }
   0xd   :  { %2162 = vmatmul.mubr.msk.bf16.vlgmr.msra.gmra.mxu0 %vm310_vm0, %v2696_v19  ;;  %2163 = vmatmul.mubr.msk.bf16.vlgmr.msra.gmra.mxu1 %vm310_vm0, %v2696_v19  ;;  %v2145_v63 = vcombine.high %v36_v58, %v44_v59  ;;  %v2483_v1 = vld [vmem:[%s3295_s3 + $0x78] sm:$0xff]   ;;  %v2144_v2 = vcombine.low %v36_v58, %v44_v59  ;;  %v2488_v8 = vld [vmem:[%s3295_s3 + $0xf0] sm:$0xff]   ;;  %v2493_v12 = vld [vmem:[%s3295_s3 + $0x28] sm:$0xff]  }
   0xe   :  { %413 = vmatpush1.bf16.msra.mxu0 %v2150_v28  ;;  %456 = vmatpush1.bf16.msra.mxu1 %v2152_v29  ;;  %v2484_v4 = vld [vmem:[%s3295_s3 + $0xf8] sm:$0xff]   ;;  %v2490_v9 = vld [vmem:[%s3295_s3 + $0xb0] sm:$0xff]   ;;  %v2494_v13 = vld [vmem:[%s3295_s3 + $0xa8] sm:$0xff]  }
   0xf   :  { %414 = vmatprep.subr.bf16.mxu0 %v2135_v30  ;;  %457 = vmatprep.subr.bf16.mxu1 %v2137_v31  ;;  %v2485_v5 = vld [vmem:[%s3295_s3 + $0x38] sm:$0xff]   ;;  %v2495_v14 = vld [vmem:[%s3295_s3 + $0x60] sm:$0xff]   ;;  %v2503_v22 = vld [vmem:[%s3295_s3 + $0x50] sm:$0xff]  }
  0x10   :  { %432 = vmatprep.mubr.bf16.mxu0 %v2617_v3  ;;  %475 = vmatprep.mubr.bf16.mxu1 %v2617_v3  ;;  %v2486_v6 = vld [vmem:[%s3295_s3 + $0xb8] sm:$0xff]   ;;  %v2496_v15 = vld [vmem:[%s3295_s3 + $0xe0] sm:$0xff]   ;;  %v2504_v23 = vld [vmem:[%s3295_s3 + $0xd0] sm:$0xff]  }
  0x11   :  { %v2497_v16 = vld [vmem:[%s3295_s3 + $0x20] sm:$0xff]   ;;  %v2499_v18 = vld [vmem:[%s3295_s3 + $0x58] sm:$0xff]   ;;  %v2505_v24 = vld [vmem:[%s3295_s3 + $0x10] sm:$0xff]  }
  0x12   :  { %415 = vmatpush1.bf16.msra.mxu0 %v2134_v36  ;;  %458 = vmatpush1.bf16.msra.mxu1 %v2136_v38  ;;  %v2498_v17 = vld [vmem:[%s3295_s3 + $0xa0] sm:$0xff]   ;;  %v2501_v20 = vld [vmem:[%s3295_s3 + $0x18] sm:$0xff]   ;;  %v2506_v25 = vld [vmem:[%s3295_s3 + $0x90] sm:$0xff]   ;;  %v65_v36 = vlaneseq }
  0x13   :  { %498 = vmatprep.subr.bf16.mxu0 %v2155_v39  ;;  %541 = vmatprep.subr.bf16.mxu1 %v2157_v41  ;;  %v2502_v21 = vld [vmem:[%s3295_s3 + $0x98] sm:$0xff]   ;;  %v2507_v26 = vld [vmem:[%s3295_s3 + $0x48] sm:$0xff]   ;;  %v2511_v30 = vld [vmem:[%s3295_s3 + $0x40] sm:$0xff]  }
  0x14   :  { %v2508_v27 = vld [vmem:[%s3295_s3 + $0xc8] sm:$0xff]   ;;  %v2512_v31 = vld [vmem:[%s3295_s3 + $0xc0] sm:$0xff]   ;;  %v2515_v34 = vld [vmem:[%s3295_s3 + $0x178] sm:$0xff]   ;;  %v2885_v37 = vshrl.u32 %v65_v36, 7 }
  0x15   :  { %2164 = vmatmul.mubr.msk.bf16.vlgmr.msra.gmra.mxu0 %vm310_vm0, %v2696_v19  ;;  %2165 = vmatmul.mubr.msk.bf16.vlgmr.msra.gmra.mxu1 %vm310_vm0, %v2696_v19  ;;  %v2509_v28 = vld [vmem:[%s3295_s3 + $0x8] sm:$0xff]   ;;  %v2513_v32 = vld [vmem:[%s3295_s3] sm:$0xff]   ;;  %v2516_v35 = vld [vmem:[%s3295_s3 + $0x1f8] sm:$0xff]  }
  0x16   :  { %499 = vmatpush1.bf16.msra.mxu0 %v2154_v44  ;;  %542 = vmatpush1.bf16.msra.mxu1 %v2156_v46  ;;  %v2510_v29 = vld [vmem:[%s3295_s3 + $0x88] sm:$0xff]   ;;  %v2514_v33 = vld [vmem:[%s3295_s3 + $0x80] sm:$0xff]   ;;  %v71_v38 = vsub.s32 1, %v2885_v37  ;;  %v67_v39 = vsub.s32 0, %v2885_v37  ;;  %v79_v40 = vsub.s32 3, %v2885_v37  ;;  %v75_v42 = vsub.s32 2, %v2885_v37 }
  0x17   :  { %500 = vmatprep.subr.bf16.mxu0 %v2139_v47  ;;  %543 = vmatprep.subr.bf16.mxu1 %v2141_v49  ;;  %v2893_v41 = vld [vmem:[%s3296_s2] sm:$0xff]  ;;  %v87_v51 = vsub.s32 5, %v2885_v37  ;;  %v95_v53 = vsub.s32 7, %v2885_v37  ;;  %v2524_v36 = vld [vmem:[%s3295_s3 + $0x1e8] sm:$0xff]  }
  0x18   :  { %518 = vmatprep.mubr.bf16.mxu0 %v2617_v3  ;;  %561 = vmatprep.mubr.bf16.mxu1 %v2617_v3  ;;  %v72_v45 = vrot.slane %v2893_v41, %v71_v38  ;;  %v68_v46 = vrot.slane %v2893_v41, %v67_v39  ;;  %v80_v48 = vrot.slane %v2893_v41, %v79_v40 }
  0x19   :  { %v76_v49 = vrot.slane %v2893_v41, %v75_v42 }
  0x1a   :  { %501 = vmatpush1.bf16.msra.mxu0 %v2138_v52  ;;  %544 = vmatpush1.bf16.msra.mxu1 %v2140_v54 }
  0x1b   :  { %584 = vmatprep.subr.bf16.mxu0 %v2159_v55  ;;  %627 = vmatprep.subr.bf16.mxu1 %v2161_v57 }
  0x1d   :  { %2166 = vmatmul.mubr.msk.bf16.vlgmr.msra.gmra.mxu0 %vm310_vm0, %v2696_v19  ;;  %2167 = vmatmul.mubr.msk.bf16.vlgmr.msra.gmra.mxu1 %vm310_vm0, %v2696_v19 }
  0x1e   :  { %585 = vmatpush1.bf16.msra.mxu0 %v2158_v60  ;;  %628 = vmatpush1.bf16.msra.mxu1 %v2160_v61 }
  0x1f   :  { %586 = vmatprep.subr.bf16.mxu0 %v2143_v62  ;;  %629 = vmatprep.subr.bf16.mxu1 %v2145_v63 }
  0x20   :  { %604 = vmatprep.mubr.bf16.mxu0 %v2617_v3  ;;  %647 = vmatprep.mubr.bf16.mxu1 %v2617_v3  ;;  %v2489_v3 = vld [vmem:[%s3295_s3 + $0x30] sm:$0xff]  }
  0x22   :  { %587 = vmatpush1.bf16.msra.mxu0 %v2142_v0  ;;  %630 = vmatpush1.bf16.msra.mxu1 %v2144_v2  ;;  %v88_v0 = vrot.slane %v2893_v41, %v87_v51 }
  0x23   :  { %2305 = vmatprep.subr.bf16.mxu0 %v2483_v1  ;;  %2327 = vmatprep.subr.bf16.mxu1 %v2484_v4 }
  0x25   :  { %2168 = vmatmul.mubr.msk.bf16.vlgmr.msra.gmra.mxu0 %vm310_vm0, %v2696_v19  ;;  %2169 = vmatmul.mubr.msk.bf16.vlgmr.msra.gmra.mxu1 %vm310_vm0, %v2696_v19  ;;  %v2500_v19 = vld [vmem:[%s3295_s3 + $0xd8] sm:$0xff]  }
  0x26   :  { %2306 = vmatpush3.bf16.msra.mxu0 %v2485_v5  ;;  %2328 = vmatpush3.bf16.msra.mxu1 %v2486_v6  ;;  %v96_v5 = vrot.slane %v2893_v41, %v95_v53 }
  0x27   :  { %2307 = vmatprep.subr.bf16.mxu0 %v2487_v7  ;;  %2329 = vmatprep.subr.bf16.mxu1 %v2488_v8 }
  0x2a   :  { %2308 = vmatpush3.bf16.msra.mxu0 %v2489_v3  ;;  %2330 = vmatpush3.bf16.msra.mxu1 %v2490_v9 }
  0x2b   :  { %2309 = vmatprep.subr.bf16.mxu0 %v2491_v10  ;;  %2331 = vmatprep.subr.bf16.mxu1 %v2492_v11 }
  0x2e   :  { %2310 = vmatpush3.bf16.msra.mxu0 %v2493_v12  ;;  %2332 = vmatpush3.bf16.msra.mxu1 %v2494_v13 }
  0x2f   :  { %2311 = vmatprep.subr.bf16.mxu0 %v2495_v14  ;;  %2333 = vmatprep.subr.bf16.mxu1 %v2496_v15  ;;  %v2517_v15 = vld [vmem:[%s3295_s3 + $0x138] sm:$0xff]  }
  0x32   :  { %2312 = vmatpush3.bf16.msra.mxu0 %v2497_v16  ;;  %2334 = vmatpush3.bf16.msra.mxu1 %v2498_v17 }
  0x33   :  { %2313 = vmatprep.subr.bf16.mxu0 %v2499_v18  ;;  %2335 = vmatprep.subr.bf16.mxu1 %v2500_v19 }
  0x36   :  { %2314 = vmatpush3.bf16.msra.mxu0 %v2501_v20  ;;  %2336 = vmatpush3.bf16.msra.mxu1 %v2502_v21  ;;  %v2518_v20 = vld [vmem:[%s3295_s3 + $0x1b8] sm:$0xff]   ;;  %v2519_v21 = vld [vmem:[%s3295_s3 + $0x170] sm:$0xff]  }
  0x37   :  { %2315 = vmatprep.subr.bf16.mxu0 %v2503_v22  ;;  %2337 = vmatprep.subr.bf16.mxu1 %v2504_v23 }
  0x3a   :  { %2316 = vmatpush3.bf16.msra.mxu0 %v2505_v24  ;;  %2338 = vmatpush3.bf16.msra.mxu1 %v2506_v25  ;;  %v2520_v25 = vld [vmem:[%s3295_s3 + $0x1f0] sm:$0xff]  }
  0x3b   :  { %2317 = vmatprep.subr.bf16.mxu0 %v2507_v26  ;;  %2339 = vmatprep.subr.bf16.mxu1 %v2508_v27 }
  0x3e   :  { %2318 = vmatpush3.bf16.msra.mxu0 %v2509_v28  ;;  %2340 = vmatpush3.bf16.msra.mxu1 %v2510_v29  ;;  %v2521_v28 = vld [vmem:[%s3295_s3 + $0x130] sm:$0xff]  }
  0x3f   :  { %2319 = vmatprep.subr.bf16.mxu0 %v2511_v30  ;;  %2341 = vmatprep.subr.bf16.mxu1 %v2512_v31 }
  0x42   :  { %2320 = vmatpush3.bf16.msra.mxu0 %v2513_v32  ;;  %2342 = vmatpush3.bf16.msra.mxu1 %v2514_v33  ;;  %v2522_v32 = vld [vmem:[%s3295_s3 + $0x1b0] sm:$0xff]   ;;  %v2523_v33 = vld [vmem:[%s3295_s3 + $0x168] sm:$0xff]  }
  0x43   :  { %2349 = vmatprep.subr.bf16.mxu0 %v2515_v34  ;;  %2371 = vmatprep.subr.bf16.mxu1 %v2516_v35 }
  0xcd   :  { %v348_v43 = vpop.f32.mrf.mxu0  ;;  %v391_v44 = vpop.f32.mrf.mxu1 }
  0xce   :  { %v349_v57 = vadd.f32 %v348_v43, %v68_v46  ;;  %v392_v61 = vadd.f32 %v391_v44, %v76_v49 }
  0xcf   :  { %v350_v47 = vpop.f32.mrf.mxu0  ;;  %v393_v50 = vpop.f32.mrf.mxu1 }
  0xd0   :  { %v351_v54 = vadd.f32 %v350_v47, %v72_v45  ;;  %v394_v58 = vadd.f32 %v393_v50, %v80_v48  ;;  %v658_v9 = vmax.f32 %v349_v57, 0.0  ;;  %v660_v13 = vmax.f32 %v392_v61, 0.0  ;;  %v2526_v47 = vld [vmem:[%s3295_s3 + $0x1a8] sm:$0xff]   ;;  %v2528_v50 = vld [vmem:[%s3295_s3 + $0x1e0] sm:$0xff]   ;;  %v2531_v57 = vld [vmem:[%s3295_s3 + $0x158] sm:$0xff]  }
  0xd1   :  { %v352_v52 = vpop.f32.mrf.mxu0  ;;  %v395_v56 = vpop.f32.mrf.mxu1 }
  0xd2   :  { %v353_v55 = vadd.f32 %v352_v52, %v68_v46  ;;  %v396_v59 = vadd.f32 %v395_v56, %v76_v49  ;;  %v659_v6 = vmax.f32 %v351_v54, 0.0  ;;  %v661_v10 = vmax.f32 %v394_v58, 0.0  ;;  %v2529_v54 = vld [vmem:[%s3295_s3 + $0x120] sm:$0xff]   ;;  %v2532_v58 = vld [vmem:[%s3295_s3 + $0x1d8] sm:$0xff]  }
  0xd3   :  { %v354_v60 = vpop.f32.mrf.mxu0  ;;  %v397_v63 = vpop.f32.mrf.mxu1  ;;  %v2530_v56 = vld [vmem:[%s3295_s3 + $0x1a0] sm:$0xff]  }
  0xd4   :  { %v355_v62 = vadd.f32 %v354_v60, %v72_v45  ;;  %v674_v1 = vmax.f32 %v353_v55, 0.0  ;;  %v398_v2 = vadd.f32 %v397_v63, %v80_v48  ;;  %v676_v7 = vmax.f32 %v396_v59, 0.0  ;;  %v2525_v45 = vld [vmem:[%s3295_s3 + $0x128] sm:$0xff]   ;;  %v2527_v48 = vld [vmem:[%s3295_s3 + $0x160] sm:$0xff]   ;;  %v2533_v60 = vld [vmem:[%s3295_s3 + $0x118] sm:$0xff]  }
  0xd5   :  { %v2913_v4 = vpop.f32.mrf.mxu0  ;;  %v2918_v3 = vpop.f32.mrf.mxu1  ;;  %v2534_v63 = vld [vmem:[%s3295_s3 + $0x198] sm:$0xff]  }
  0xd6   :  { %v675_v8 = vmax.f32 %v355_v62, 0.0  ;;  %v677_v11 = vmax.f32 %v398_v2, 0.0  ;;  %v690_v18 = vpack.c.bf16 %v674_v1, %v658_v9  ;;  %v692_v24 = vpack.c.bf16 %v676_v7, %v660_v13  ;;  %v2536_v2 = vld [vmem:[%s3295_s3 + $0x1d0] sm:$0xff]   ;;  %v2540_v13 = vld [vmem:[%s3295_s3 + $0x1c8] sm:$0xff]  }
  0xd7   :  { %v436_v12 = vpop.f32.mrf.mxu0  ;;  %v479_v17 = vpop.f32.mrf.mxu1  ;;  %v83_v62 = vsub.s32 4, %v2885_v37  ;;  %v91_v1 = vsub.s32 6, %v2885_v37  ;;  %v2537_v7 = vld [vmem:[%s3295_s3 + $0x110] sm:$0xff]   ;;  %v2606_v37 = vld [vmem:[%s3295_s3 + $0x388] sm:$0xff]  }
  0xd8   :  { %v691_v14 = vpack.c.bf16 %v675_v8, %v659_v6  ;;  %v437_v16 = vadd.f32 %v436_v12, %v88_v0  ;;  %v693_v19 = vpack.c.bf16 %v677_v11, %v661_v10  ;;  %v480_v23 = vadd.f32 %v479_v17, %v96_v5  ;;  %v2538_v10 = vld [vmem:[%s3295_s3 + $0x190] sm:$0xff]   ;;  %v2539_v11 = vld [vmem:[%s3295_s3 + $0x148] sm:$0xff]  }
  0xd9   :  { %v2929_v22 = vpop.f32.mrf.mxu0  ;;  %v2934_v26 = vpop.f32.mrf.mxu1  ;;  %v84_v9 = vrot.slane %v2893_v41, %v83_v62  ;;  %v92_v12 = vrot.slane %v2893_v41, %v91_v1  ;;  %v2541_v17 = vld [vmem:[%s3295_s3 + $0x108] sm:$0xff]  }
  0xda   :  { %1769 = vmatprep.mubr.bf16.mxu0 %v691_v14  ;;  %1810 = vmatprep.mubr.bf16.mxu1 %v693_v19  ;;  %v663_v29 = vmax.f32 %v437_v16, 0.0  ;;  %v665_v34 = vmax.f32 %v480_v23, 0.0 }
  0xdb   :  { %1770 = vmatmul.mubr.bf16.vlgmr.msra.gmra.mxu0 %v690_v18  ;;  %v440_v27 = vpop.f32.mrf.mxu0  ;;  %1811 = vmatmul.mubr.bf16.vlgmr.msra.gmra.mxu1 %v692_v24  ;;  %v483_v31 = vpop.f32.mrf.mxu1  ;;  %v435_v18 = vadd.f32 %v2913_v4, %v84_v9  ;;  %v439_v19 = vadd.f32 %v2929_v22, %v84_v9  ;;  %v2544_v4 = vld [vmem:[%s3295_s3 + $0x1c0] sm:$0xff]  }
  0xdc   :  { %2350 = vmatpush3.bf16.msra.mxu0 %v2517_v15  ;;  %v441_v30 = vadd.f32 %v440_v27, %v88_v0  ;;  %2372 = vmatpush3.bf16.msra.mxu1 %v2518_v20  ;;  %v484_v35 = vadd.f32 %v483_v31, %v96_v5  ;;  %v2535_v0 = vld [vmem:[%s3295_s3 + $0x150] sm:$0xff]   ;;  %v2993_v5 = vld [vmem:[%s3296_s2 + $0x8] sm:$0xff]  ;;  %v478_v20 = vadd.f32 %v2918_v3, %v92_v12  ;;  %v2545_v27 = vld [vmem:[%s3295_s3 + $0x100] sm:$0xff]  }
  0xdd   :  { %2351 = vmatprep.subr.bf16.mxu0 %v2519_v21  ;;  %2373 = vmatprep.subr.bf16.mxu1 %v2520_v25  ;;  %v2960_v52 = vpop.f32.mrf.mxu0  ;;  %v2965_v55 = vpop.f32.mrf.mxu1  ;;  %v104_v14 = vrot.slane %v2993_v5, %v71_v38  ;;  %v112_v15 = vrot.slane %v2993_v5, %v79_v40  ;;  %v2542_v38 = vld [vmem:[%s3295_s3 + $0x188] sm:$0xff]   ;;  %v2543_v40 = vld [vmem:[%s3295_s3 + $0x140] sm:$0xff]   ;;  %v482_v21 = vadd.f32 %v2934_v26, %v92_v12  ;;  %v2547_v26 = vld [vmem:[%s3295_s3 + $0x278] sm:$0xff]  }
  0xde   :  { %v679_v43 = vmax.f32 %v441_v30, 0.0  ;;  %v681_v44 = vmax.f32 %v484_v35, 0.0  ;;  %v2546_v3 = vld [vmem:[%s3295_s3 + $0x180] sm:$0xff]   ;;  %v664_v30 = vmax.f32 %v478_v20, 0.0  ;;  %v2571_v20 = vld [vmem:[%s3295_s3 + $0x248] sm:$0xff]  }
  0xdf   :  { %v522_v59 = vpop.f32.mrf.mxu0  ;;  %v565_v61 = vpop.f32.mrf.mxu1  ;;  %v680_v31 = vmax.f32 %v482_v21, 0.0  ;;  %v2562_v9 = vld [vmem:[%s3295_s3 + $0x2a0] sm:$0xff]   ;;  %v108_v21 = vrot.slane %v2993_v5, %v75_v42 }
  0xe0   :  { %2352 = vmatpush3.bf16.msra.mxu0 %v2521_v28  ;;  %v695_v46 = vpack.c.bf16 %v679_v43, %v663_v29  ;;  %2374 = vmatpush3.bf16.msra.mxu1 %v2522_v32  ;;  %v697_v49 = vpack.c.bf16 %v681_v44, %v665_v34  ;;  %v523_v22 = vadd.f32 %v522_v59, %v104_v14  ;;  %v662_v28 = vmax.f32 %v435_v18, 0.0  ;;  %v2548_v32 = vld [vmem:[%s3295_s3 + $0x2f8] sm:$0xff]   ;;  %v2557_v59 = vld [vmem:[%s3295_s3 + $0x228] sm:$0xff]   ;;  %v2569_v18 = vld [vmem:[%s3295_s3 + $0x210] sm:$0xff]  }
  0xe1   :  { %2353 = vmatprep.subr.bf16.mxu0 %v2523_v33  ;;  %2375 = vmatprep.subr.bf16.mxu1 %v2524_v36  ;;  %v2995_v6 = vpop.f32.mrf.mxu0  ;;  %v3000_v8 = vpop.f32.mrf.mxu1  ;;  %v566_v24 = vadd.f32 %v565_v61, %v112_v15  ;;  %v678_v29 = vmax.f32 %v439_v19, 0.0  ;;  %v2549_v43 = vld [vmem:[%s3295_s3 + $0x238] sm:$0xff]   ;;  %v2559_v61 = vld [vmem:[%s3295_s3 + $0x260] sm:$0xff]  }
  0xe2   :  { %1851 = vmatprep.mubr.bf16.mxu0 %v695_v46  ;;  %1892 = vmatprep.mubr.bf16.mxu1 %v697_v49  ;;  %v667_v33 = vmax.f32 %v523_v22, 0.0  ;;  %v2551_v46 = vld [vmem:[%s3295_s3 + $0x270] sm:$0xff]   ;;  %v128_v22 = vrot.slane %v2993_v5, %v95_v53  ;;  %v2575_v53 = vld [vmem:[%s3295_s3 + $0x240] sm:$0xff]  }
  0xe3   :  { %v526_v16 = vpop.f32.mrf.mxu0  ;;  %v569_v41 = vpop.f32.mrf.mxu1  ;;  %v669_v35 = vmax.f32 %v566_v24, 0.0  ;;  %v694_v44 = vpack.c.bf16 %v678_v29, %v662_v28  ;;  %v2573_v24 = vld [vmem:[%s3295_s3 + $0x208] sm:$0xff]   ;;  %v564_v28 = vadd.f32 %v2965_v55, %v108_v21  ;;  %v568_v29 = vadd.f32 %v3000_v8, %v108_v21  ;;  %v2578_v55 = vld [vmem:[%s3295_s3 + $0x280] sm:$0xff]   ;;  %v2579_v8 = vld [vmem:[%s3295_s3 + $0x378] sm:$0xff]  }
  0xe4   :  { %2354 = vmatpush3.bf16.msra.mxu0 %v2525_v45  ;;  %2376 = vmatpush3.bf16.msra.mxu1 %v2526_v47  ;;  %v527_v23 = vadd.f32 %v526_v16, %v104_v14  ;;  %v570_v25 = vadd.f32 %v569_v41, %v112_v15  ;;  %v2550_v45 = vld [vmem:[%s3295_s3 + $0x2b8] sm:$0xff]   ;;  %v696_v47 = vpack.c.bf16 %v680_v31, %v664_v30  ;;  %v2567_v16 = vld [vmem:[%s3295_s3 + $0x250] sm:$0xff]   ;;  %v2577_v31 = vld [vmem:[%s3295_s3 + $0x200] sm:$0xff]  }
  0xe5   :  { %2355 = vmatprep.subr.bf16.mxu0 %v2527_v48  ;;  %2377 = vmatprep.subr.bf16.mxu1 %v2528_v50  ;;  %v2552_v48 = vld [vmem:[%s3295_s3 + $0x2f0] sm:$0xff]   ;;  %v2566_v15 = vld [vmem:[%s3295_s3 + $0x298] sm:$0xff]  }
  0xe6   :  { %v683_v34 = vmax.f32 %v527_v23, 0.0  ;;  %v685_v36 = vmax.f32 %v570_v25, 0.0  ;;  %v2602_v21 = vld [vmem:[%s3295_s3 + $0x390] sm:$0xff]  }
  0xe8   :  { %2356 = vmatpush3.bf16.msra.mxu0 %v2529_v54  ;;  %2378 = vmatpush3.bf16.msra.mxu1 %v2530_v56  ;;  %v699_v49 = vpack.c.bf16 %v683_v34, %v667_v33  ;;  %v701_v50 = vpack.c.bf16 %v685_v36, %v669_v35  ;;  %v2553_v54 = vld [vmem:[%s3295_s3 + $0x230] sm:$0xff]   ;;  %v668_v34 = vmax.f32 %v564_v28, 0.0  ;;  %v684_v35 = vmax.f32 %v568_v29, 0.0  ;;  %v2580_v36 = vld [vmem:[%s3295_s3 + $0x3f8] sm:$0xff]  }
  0xe9   :  { %2357 = vmatprep.subr.bf16.mxu0 %v2531_v57  ;;  %2379 = vmatprep.subr.bf16.mxu1 %v2532_v58  ;;  %v2554_v56 = vld [vmem:[%s3295_s3 + $0x2b0] sm:$0xff]   ;;  %v2555_v57 = vld [vmem:[%s3295_s3 + $0x268] sm:$0xff]  }
  0xea   :  { %v2556_v58 = vld [vmem:[%s3295_s3 + $0x2e8] sm:$0xff]  }
  0xec   :  { %2358 = vmatpush3.bf16.msra.mxu0 %v2533_v60  ;;  %2380 = vmatpush3.bf16.msra.mxu1 %v2534_v63  ;;  %v2558_v60 = vld [vmem:[%s3295_s3 + $0x2a8] sm:$0xff]   ;;  %v2560_v63 = vld [vmem:[%s3295_s3 + $0x2e0] sm:$0xff]  }
  0xed   :  { %2359 = vmatprep.subr.bf16.mxu0 %v2535_v0  ;;  %2381 = vmatprep.subr.bf16.mxu1 %v2536_v2  ;;  %v3087_v0 = vpop.f32.mrf.mxu0  ;;  %v2561_v2 = vld [vmem:[%s3295_s3 + $0x220] sm:$0xff]  }
  0xef   :  { %v608_v12 = vpop.f32.mrf.mxu0 }
  0xf0   :  { %2360 = vmatpush3.bf16.msra.mxu0 %v2537_v7  ;;  %2382 = vmatpush3.bf16.msra.mxu1 %v2538_v10  ;;  %v3092_v7 = vpop.f32.mrf.mxu1  ;;  %v2563_v10 = vld [vmem:[%s3295_s3 + $0x258] sm:$0xff]  }
  0xf1   :  { %2361 = vmatprep.subr.bf16.mxu0 %v2539_v11  ;;  %2383 = vmatprep.subr.bf16.mxu1 %v2540_v13  ;;  %v2564_v11 = vld [vmem:[%s3295_s3 + $0x2d8] sm:$0xff]   ;;  %v3115_v41 = vpop.f32.mrf.mxu0 }
  0xf2   :  { %v2565_v13 = vld [vmem:[%s3295_s3 + $0x218] sm:$0xff]   ;;  %v651_v14 = vpop.f32.mrf.mxu1 }
  0xf3   :  { %v612_v23 = vpop.f32.mrf.mxu0 }
  0xf4   :  { %2362 = vmatpush3.bf16.msra.mxu0 %v2541_v17  ;;  %2384 = vmatpush3.bf16.msra.mxu1 %v2542_v38  ;;  %v2568_v17 = vld [vmem:[%s3295_s3 + $0x2d0] sm:$0xff]   ;;  %v3120_v19 = vpop.f32.mrf.mxu1  ;;  %v100_v38 = vrot.slane %v2993_v5, %v67_v39  ;;  %v120_v39 = vrot.slane %v2993_v5, %v87_v51  ;;  %v2574_v51 = vld [vmem:[%s3295_s3 + $0x288] sm:$0xff]  }
  0xf5   :  { %2363 = vmatprep.subr.bf16.mxu0 %v2543_v40  ;;  %2385 = vmatprep.subr.bf16.mxu1 %v2544_v4  ;;  %v2570_v40 = vld [vmem:[%s3295_s3 + $0x290] sm:$0xff]   ;;  %v2572_v4 = vld [vmem:[%s3295_s3 + $0x2c8] sm:$0xff]  }
  0xf6   :  { %v655_v42 = vpop.f32.mrf.mxu1  ;;  %v521_v25 = vadd.f32 %v2960_v52, %v100_v38  ;;  %v2576_v52 = vld [vmem:[%s3295_s3 + $0x2c0] sm:$0xff]  }
  0xf7   :  { %v656_v30 = vadd.f32 %v655_v42, %v128_v22 }
  0xf8   :  { %2364 = vmatpush3.bf16.msra.mxu0 %v2545_v27  ;;  %2386 = vmatpush3.bf16.msra.mxu1 %v2546_v3  ;;  %v525_v27 = vadd.f32 %v2995_v6, %v100_v38  ;;  %v609_v6 = vadd.f32 %v608_v12, %v120_v39  ;;  %v613_v3 = vadd.f32 %v612_v23, %v120_v39  ;;  %v2593_v12 = vld [vmem:[%s3295_s3 + $0x320] sm:$0xff]   ;;  %v2600_v38 = vld [vmem:[%s3295_s3 + $0x3d0] sm:$0xff]  }
  0xf9   :  { %2393 = vmatprep.subr.bf16.mxu0 %v2547_v26  ;;  %2415 = vmatprep.subr.bf16.mxu1 %v2548_v32  ;;  %v652_v26 = vadd.f32 %v651_v14, %v128_v22  ;;  %v666_v32 = vmax.f32 %v521_v25, 0.0  ;;  %v2595_v14 = vld [vmem:[%s3295_s3 + $0x358] sm:$0xff]   ;;  %v124_v39 = vrot.slane %v2993_v5, %v91_v1  ;;  %v2604_v22 = vld [vmem:[%s3295_s3 + $0x3c8] sm:$0xff]   ;;  %v2607_v1 = vld [vmem:[%s3295_s3 + $0x340] sm:$0xff]  }
  0xfa   :  { %v682_v33 = vmax.f32 %v525_v27, 0.0 }
  0xfb   :  { %1852 = vmatmul.mubr.bf16.vlgmr.msra.gmra.mxu0 %v694_v44  ;;  %1893 = vmatmul.mubr.bf16.vlgmr.msra.gmra.mxu1 %v696_v47  ;;  %v687_v44 = vmax.f32 %v613_v3, 0.0  ;;  %v2581_v47 = vld [vmem:[%s3295_s3 + $0x338] sm:$0xff]   ;;  %v654_v42 = vadd.f32 %v3120_v19, %v124_v39 }
  0xfc   :  { %2394 = vmatpush3.bf16.msra.mxu0 %v2549_v43  ;;  %2416 = vmatpush3.bf16.msra.mxu1 %v2550_v45  ;;  %v671_v43 = vmax.f32 %v609_v6, 0.0  ;;  %v673_v45 = vmax.f32 %v652_v26, 0.0 }
  0xfd   :  { %2395 = vmatprep.subr.bf16.mxu0 %v2551_v46  ;;  %2417 = vmatprep.subr.bf16.mxu1 %v2552_v48  ;;  %v689_v46 = vmax.f32 %v656_v30, 0.0  ;;  %v698_v48 = vpack.c.bf16 %v682_v33, %v666_v32  ;;  %v688_v19 = vmax.f32 %v654_v42, 0.0 }
  0xfe   :  { %1933 = vmatprep.mubr.bf16.mxu0 %v699_v49  ;;  %1974 = vmatprep.mubr.bf16.mxu1 %v701_v50  ;;  %v2582_v49 = vld [vmem:[%s3295_s3 + $0x3b8] sm:$0xff]   ;;  %v2583_v50 = vld [vmem:[%s3295_s3 + $0x370] sm:$0xff]  }
 0x100   :  { %2396 = vmatpush3.bf16.msra.mxu0 %v2553_v54  ;;  %2418 = vmatpush3.bf16.msra.mxu1 %v2554_v56  ;;  %v700_v54 = vpack.c.bf16 %v684_v35, %v668_v34  ;;  %v2584_v56 = vld [vmem:[%s3295_s3 + $0x3f0] sm:$0xff]  }
 0x101   :  { %2397 = vmatprep.subr.bf16.mxu0 %v2555_v57  ;;  %2419 = vmatprep.subr.bf16.mxu1 %v2556_v58  ;;  %v703_v57 = vpack.c.bf16 %v687_v44, %v671_v43  ;;  %v705_v58 = vpack.c.bf16 %v689_v46, %v673_v45  ;;  %v2170_v45 = vld [vmem:[%s3297_s4] ss:$0 sm:$0xff] }
 0x104   :  { %2398 = vmatpush3.bf16.msra.mxu0 %v2557_v59  ;;  %2420 = vmatpush3.bf16.msra.mxu1 %v2558_v60  ;;  %v2585_v59 = vld [vmem:[%s3295_s3 + $0x330] sm:$0xff]  }
 0x105   :  { %2399 = vmatprep.subr.bf16.mxu0 %v2559_v61  ;;  %2421 = vmatprep.subr.bf16.mxu1 %v2560_v63  ;;  %v2586_v60 = vld [vmem:[%s3295_s3 + $0x3b0] sm:$0xff]   ;;  %v2587_v61 = vld [vmem:[%s3295_s3 + $0x368] sm:$0xff]  }
 0x106   :  { %v2588_v63 = vld [vmem:[%s3295_s3 + $0x3e8] sm:$0xff]  }
 0x108   :  { %2400 = vmatpush3.bf16.msra.mxu0 %v2561_v2  ;;  %2422 = vmatpush3.bf16.msra.mxu1 %v2562_v9  ;;  %v2589_v2 = vld [vmem:[%s3295_s3 + $0x328] sm:$0xff]  }
 0x109   :  { %2401 = vmatprep.subr.bf16.mxu0 %v2563_v10  ;;  %2423 = vmatprep.subr.bf16.mxu1 %v2564_v11  ;;  %v2590_v9 = vld [vmem:[%s3295_s3 + $0x3a8] sm:$0xff]   ;;  %v2591_v10 = vld [vmem:[%s3295_s3 + $0x360] sm:$0xff]  }
 0x10a   :  { %v2592_v11 = vld [vmem:[%s3295_s3 + $0x3e0] sm:$0xff]  }
 0x10c   :  { %2402 = vmatpush3.bf16.msra.mxu0 %v2565_v13  ;;  %2424 = vmatpush3.bf16.msra.mxu1 %v2566_v15  ;;  %v2594_v13 = vld [vmem:[%s3295_s3 + $0x3a0] sm:$0xff]   ;;  %v2596_v15 = vld [vmem:[%s3295_s3 + $0x3d8] sm:$0xff]  }
 0x10d   :  { %2403 = vmatprep.subr.bf16.mxu0 %v2567_v16  ;;  %2425 = vmatprep.subr.bf16.mxu1 %v2568_v17  ;;  %v2597_v16 = vld [vmem:[%s3295_s3 + $0x318] sm:$0xff]  }
 0x10e   :  { %v2598_v17 = vld [vmem:[%s3295_s3 + $0x398] sm:$0xff]  }
 0x110   :  { %2404 = vmatpush3.bf16.msra.mxu0 %v2569_v18  ;;  %2426 = vmatpush3.bf16.msra.mxu1 %v2570_v40  ;;  %v2599_v18 = vld [vmem:[%s3295_s3 + $0x350] sm:$0xff]  }
 0x111   :  { %2405 = vmatprep.subr.bf16.mxu0 %v2571_v20  ;;  %2427 = vmatprep.subr.bf16.mxu1 %v2572_v4  ;;  %v2601_v40 = vld [vmem:[%s3295_s3 + $0x310] sm:$0xff]   ;;  %v116_v20 = vrot.slane %v2993_v5, %v83_v62  ;;  %v2603_v4 = vld [vmem:[%s3295_s3 + $0x348] sm:$0xff]   ;;  %v650_v5 = vadd.f32 %v3092_v7, %v124_v39  ;;  %v2610_v7 = vld [vmem:[%s3295_s3 + $0x380] sm:$0xff]  }
 0x112   :  { %v2605_v62 = vld [vmem:[%s3295_s3 + $0x308] sm:$0xff]  }
 0x113   :  { %v607_v23 = vadd.f32 %v3087_v0, %v116_v20  ;;  %v2608_v0 = vld [vmem:[%s3295_s3 + $0x3c0] sm:$0xff]  }
 0x114   :  { %2406 = vmatpush3.bf16.msra.mxu0 %v2573_v24  ;;  %2428 = vmatpush3.bf16.msra.mxu1 %v2574_v51  ;;  %v611_v24 = vadd.f32 %v3115_v41, %v116_v20  ;;  %v2609_v41 = vld [vmem:[%s3295_s3 + $0x300] sm:$0xff]   ;;  %v672_v51 = vmax.f32 %v650_v5, 0.0 }
 0x115   :  { %2407 = vmatprep.subr.bf16.mxu0 %v2575_v53  ;;  %2429 = vmatprep.subr.bf16.mxu1 %v2576_v52  ;;  %v670_v25 = vmax.f32 %v607_v23, 0.0 }
 0x116   :  { %v686_v27 = vmax.f32 %v611_v24, 0.0  ;;  %v704_v28 = vpack.c.bf16 %v688_v19, %v672_v51 }
 0x118   :  { %2408 = vmatpush3.bf16.msra.mxu0 %v2577_v31  ;;  %2430 = vmatpush3.bf16.msra.mxu1 %v2578_v55  ;;  %v702_v53 = vpack.c.bf16 %v686_v27, %v670_v25  ;;  %v2616_v25 = vld [vmem:[%s3294_s0] sm:$0xff]  }
 0x119   :  { %2437 = vmatprep.subr.bf16.mxu0 %v2579_v8  ;;  %2459 = vmatprep.subr.bf16.mxu1 %v2580_v36  ;;  %v2065_v27 = vunpack.c.l.bf16 %v2616_v25 }
 0x11b   :  { %1934 = vmatmul.mubr.bf16.vlgmr.msra.gmra.mxu0 %v698_v48  ;;  %1975 = vmatmul.mubr.bf16.vlgmr.msra.gmra.mxu1 %v700_v54 }
 0x11c   :  { %2438 = vmatpush3.bf16.msra.mxu0 %v2581_v47  ;;  %2460 = vmatpush3.bf16.msra.mxu1 %v2582_v49 }
 0x11d   :  { %2439 = vmatprep.subr.bf16.mxu0 %v2583_v50  ;;  %2461 = vmatprep.subr.bf16.mxu1 %v2584_v56 }
 0x11e   :  { %2015 = vmatprep.mubr.bf16.mxu0 %v703_v57  ;;  %2056 = vmatprep.mubr.bf16.mxu1 %v705_v58 }
 0x120   :  { %2440 = vmatpush3.bf16.msra.mxu0 %v2585_v59  ;;  %2462 = vmatpush3.bf16.msra.mxu1 %v2586_v60 }
 0x121   :  { %2441 = vmatprep.subr.bf16.mxu0 %v2587_v61  ;;  %2463 = vmatprep.subr.bf16.mxu1 %v2588_v63 }
 0x124   :  { %2442 = vmatpush3.bf16.msra.mxu0 %v2589_v2  ;;  %2464 = vmatpush3.bf16.msra.mxu1 %v2590_v9 }
 0x125   :  { %2443 = vmatprep.subr.bf16.mxu0 %v2591_v10  ;;  %2465 = vmatprep.subr.bf16.mxu1 %v2592_v11 }
 0x128   :  { %2444 = vmatpush3.bf16.msra.mxu0 %v2593_v12  ;;  %2466 = vmatpush3.bf16.msra.mxu1 %v2594_v13 }
 0x129   :  { %2445 = vmatprep.subr.bf16.mxu0 %v2595_v14  ;;  %2467 = vmatprep.subr.bf16.mxu1 %v2596_v15 }
 0x12c   :  { %2446 = vmatpush3.bf16.msra.mxu0 %v2597_v16  ;;  %2468 = vmatpush3.bf16.msra.mxu1 %v2598_v17 }
 0x12d   :  { %2447 = vmatprep.subr.bf16.mxu0 %v2599_v18  ;;  %2469 = vmatprep.subr.bf16.mxu1 %v2600_v38 }
 0x130   :  { %2448 = vmatpush3.bf16.msra.mxu0 %v2601_v40  ;;  %2470 = vmatpush3.bf16.msra.mxu1 %v2602_v21 }
 0x131   :  { %2449 = vmatprep.subr.bf16.mxu0 %v2603_v4  ;;  %2471 = vmatprep.subr.bf16.mxu1 %v2604_v22 }
 0x134   :  { %2450 = vmatpush3.bf16.msra.mxu0 %v2605_v62  ;;  %2472 = vmatpush3.bf16.msra.mxu1 %v2606_v37 }
 0x135   :  { %2451 = vmatprep.subr.bf16.mxu0 %v2607_v1  ;;  %2473 = vmatprep.subr.bf16.mxu1 %v2608_v0 }
 0x138   :  { %2452 = vmatpush3.bf16.msra.mxu0 %v2609_v41  ;;  %2474 = vmatpush3.bf16.msra.mxu1 %v2610_v7 }
 0x13b   :  { %2016 = vmatmul.mubr.bf16.vlgmr.msra.gmra.mxu0 %v702_v53  ;;  %2057 = vmatmul.mubr.bf16.vlgmr.msra.gmra.mxu1 %v704_v28 }
 0x19b   :  { %v2321_v29 = vpop.f32.mrf.mxu0  ;;  %v2343_v52 = vpop.f32.mrf.mxu1 }
 0x19d   :  { %v2322_v6 = vpop.f32.mrf.mxu0  ;;  %v2344_v3 = vpop.f32.mrf.mxu1 }
 0x19e   :  { %v2323_v44 = vadd.f32 %v2322_v6, %v2321_v29  ;;  %v2345_v56 = vadd.f32 %v2344_v3, %v2343_v52  ;;  %v2066_v3 = vunpack.c.h.bf16 %v2616_v25 }
 0x19f   :  { %v2324_v26 = vpop.f32.mrf.mxu0  ;;  %v2346_v30 = vpop.f32.mrf.mxu1 }
 0x1a0   :  { %v1772_v48 = vadd.f32 %v2323_v44, %v2170_v45 }
 0x1a1   :  { %v2325_v31 = vpop.f32.mrf.mxu0  ;;  %v2347_v33 = vpop.f32.mrf.mxu1 }
 0x1a2   :  { %v2326_v49 = vadd.f32 %v2325_v31, %v2324_v26  ;;  %v1813_v58 = vadd.f32 %v2345_v56, %v1772_v48  ;;  %v2348_v63 = vadd.f32 %v2347_v33, %v2346_v30 }
 0x1a4   :  { %v1775_v59 = vadd.f32 %v2326_v49, %v2170_v45 }
 0x1a6   :  { %v1816_v10 = vadd.f32 %v2348_v63, %v1775_v59 }
 0x1bb   :  { %v2365_v32 = vpop.f32.mrf.mxu0  ;;  %v2387_v55 = vpop.f32.mrf.mxu1 }
 0x1bd   :  { %v2366_v8 = vpop.f32.mrf.mxu0  ;;  %v2388_v34 = vpop.f32.mrf.mxu1 }
 0x1be   :  { %v2367_v57 = vadd.f32 %v2366_v8, %v2365_v32  ;;  %v2389_v11 = vadd.f32 %v2388_v34, %v2387_v55 }
 0x1bf   :  { %v2368_v35 = vpop.f32.mrf.mxu0  ;;  %v2390_v36 = vpop.f32.mrf.mxu1 }
 0x1c0   :  { %v1854_v2 = vadd.f32 %v2367_v57, %v1813_v58  ;;  %v2299_v58 = vld [vmem:[%s3298_s5] ss:$0 sm:$0xff] }
 0x1c1   :  { %v2369_v43 = vpop.f32.mrf.mxu0  ;;  %v2391_v47 = vpop.f32.mrf.mxu1 }
 0x1c2   :  { %v2370_v9 = vadd.f32 %v2369_v43, %v2368_v35  ;;  %v1895_v15 = vadd.f32 %v2389_v11, %v1854_v2  ;;  %v2392_v17 = vadd.f32 %v2391_v47, %v2390_v36 }
 0x1c4   :  { %v1857_v16 = vadd.f32 %v2370_v9, %v1816_v10 }
 0x1c6   :  { %v1898_v21 = vadd.f32 %v2392_v17, %v1857_v16 }
 0x1db   :  { %v2409_v46 = vpop.f32.mrf.mxu0  ;;  %v2431_v50 = vpop.f32.mrf.mxu1 }
 0x1dd   :  { %v2410_v54 = vpop.f32.mrf.mxu0  ;;  %v2432_v60 = vpop.f32.mrf.mxu1 }
 0x1de   :  { %v2411_v12 = vadd.f32 %v2410_v54, %v2409_v46  ;;  %v2433_v4 = vadd.f32 %v2432_v60, %v2431_v50  ;;  %v2300_v60 = vld [vmem:[%s3299_s6] ss:$0 sm:$0xff] }
 0x1df   :  { %v2412_v61 = vpop.f32.mrf.mxu0  ;;  %v2434_v13 = vpop.f32.mrf.mxu1 }
 0x1e0   :  { %v1936_v18 = vadd.f32 %v2411_v12, %v1895_v15 }
 0x1e1   :  { %v2413_v14 = vpop.f32.mrf.mxu0  ;;  %v2435_v40 = vpop.f32.mrf.mxu1 }
 0x1e2   :  { %v2414_v38 = vadd.f32 %v2413_v14, %v2412_v61  ;;  %v1977_v62 = vadd.f32 %v2433_v4, %v1936_v18  ;;  %v2436_v5 = vadd.f32 %v2435_v40, %v2434_v13 }
 0x1e4   :  { %v1939_v23 = vadd.f32 %v2414_v38, %v1898_v21 }
 0x1e6   :  { %v1980_v51 = vadd.f32 %v2436_v5, %v1939_v23 }
 0x1fb   :  { %v2453_v20 = vpop.f32.mrf.mxu0  ;;  %v2475_v39 = vpop.f32.mrf.mxu1 }
 0x1fd   :  { %v2454_v22 = vpop.f32.mrf.mxu0  ;;  %v2476_v37 = vpop.f32.mrf.mxu1 }
 0x1fe   :  { %v2455_v24 = vadd.f32 %v2454_v22, %v2453_v20  ;;  %v2477_v0 = vadd.f32 %v2476_v37, %v2475_v39 }
 0x1ff   :  { %v2456_v1 = vpop.f32.mrf.mxu0  ;;  %v2478_v41 = vpop.f32.mrf.mxu1 }
 0x200   :  { %v2018_v42 = vadd.f32 %v2455_v24, %v1977_v62 }
 0x201   :  { %v2457_v7 = vpop.f32.mrf.mxu0  ;;  %v2479_v28 = vpop.f32.mrf.mxu1 }
 0x202   :  { %v2059_v19 = vadd.f32 %v2477_v0, %v2018_v42  ;;  %v2458_v53 = vadd.f32 %v2457_v7, %v2456_v1  ;;  %v2480_v52 = vadd.f32 %v2479_v28, %v2478_v41 }
 0x204   :  { %v2021_v29 = vadd.f32 %v2458_v53, %v1980_v51  ;;  %v2067_v6 = vadd.f32 %v2065_v27, %v2059_v19 }
 0x206   :  { %v2062_v26 = vadd.f32 %v2480_v52, %v2021_v29  ;;  %v2069_v30 = vsel %vm310_vm0, %v2067_v6, 0.0 }
 0x207   :  { %2070 = vadd.xlane.f32.xlu0 %v2069_v30 }
 0x208   :  { %v2068_v31 = vadd.f32 %v2066_v3, %v2062_v26 }
 0x20a   :  { %v2072_v32 = vsel %vm310_vm0, %v2068_v31, 0.0 }
 0x20b   :  { %2073 = vadd.xlane.f32.xlu0 %v2072_v32 }
 0x290   :  { %v2071_v33 = vpop.xlane.xlu0 %2070 }
 0x291   :  { %v2076_v55 = vmul.f32 0.03125, %v2071_v33 }
 0x293   :  { %v2078_v8 = vsub.f32 %v2067_v6, %v2076_v55 }
 0x294   :  { %v2074_v34 = vpop.xlane.xlu0 %2073 }
 0x295   :  { %v2077_v35 = vmul.f32 0.03125, %v2074_v34  ;;  %v2080_v36 = vmul.f32 %v2078_v8, %v2078_v8 }
 0x297   :  { %v2079_v43 = vsub.f32 %v2068_v31, %v2077_v35  ;;  %v2082_v44 = vsel %vm310_vm0, %v2080_v36, 0.0 }
 0x298   :  { %2083 = vadd.xlane.f32.xlu1 %v2082_v44 }
 0x299   :  { %v2081_v45 = vmul.f32 %v2079_v43, %v2079_v43 }
 0x29b   :  { %v2085_v46 = vsel %vm310_vm0, %v2081_v45, 0.0 }
 0x29c   :  { %2086 = vadd.xlane.f32.xlu1 %v2085_v46 }
 0x321   :  { %v2084_v47 = vpop.xlane.xlu1 %2083 }
 0x322   :  { %v2088_v48 = vmul.f32 0.03125, %v2084_v47 }
 0x324   :  { %v2090_v49 = vadd.f32 1e-05, %v2088_v48 }
 0x325   :  { %v2087_v50 = vpop.xlane.xlu1 %2086 }
 0x326   :  { %2612 = vrsqrt.f32 %v2090_v49  ;;  %v2089_v54 = vmul.f32 0.03125, %v2087_v50 }
 0x328   :  { %v2091_v56 = vadd.f32 1e-05, %v2089_v54 }
 0x32a   :  { %2614 = vrsqrt.f32 %v2091_v56 }
 0x333   :  { %v2613_v57 = vpop.eup %2612 }
 0x334   :  { %v2094_v59 = vmul.f32 %v2613_v57, %v2078_v8 }
 0x336   :  { %v2103_v61 = vmul.f32 %v2299_v58, %v2094_v59 }
 0x337   :  { %v2615_v63 = vpop.eup %2614 }
 0x338   :  { %v2112_v2 = vadd.f32 %v2300_v60, %v2103_v61  ;;  %v2095_v9 = vmul.f32 %v2615_v63, %v2079_v43 }
 0x33a   :  { %v2303_v10 = vpack.c.bf16 %v2112_v2, %v2112_v2  ;;  %v2104_v11 = vmul.f32 %v2299_v58, %v2095_v9 }
 0x33c   :  { %2123 = vst.msk [vmem:[%s3300_s7] sm:$0xf] %vm2122_vm1, %v2303_v10  ;;  %v2113_v12 = vadd.f32 %v2300_v60, %v2104_v11 }
 0x33e   :  { %v2304_v13 = vpack.c.bf16 %v2113_v12, %v2113_v12 }
 0x340   :  { %2124 = vst.msk [vmem:[%s3300_s7 + $0x4] sm:$0xf] %vm2122_vm1, %v2304_v13 }

</bundles_post_ra>
